<compile_context>
chip_gen: v7x
topology: tpu7x:2x2x1
jax: 0.10.0
libtpu: 0.0.40
codegen_flags: <defaults>
</compile_context>

<pallas_src>
import functools

import jax
import jax.numpy as jnp
from jax import lax
from jax.experimental import pallas as pl
from jax.experimental.pallas import tpu as pltpu

NUM_TOKENS = 4   # [prev, curr, prev*curr, curr-prev]
LANE = 128


def _round_up(x, m):
    return ((x + m - 1) // m) * m


# ----------------------------------------------------------------------------
# Fused kernel: in-kernel gather + 3x ParamsTransfer (ResMLP mixer) + score head
# ----------------------------------------------------------------------------
def light_tc_kernel(wt_ref, bt_ref, sb_ref,                 # SMEM: (3,16), (3,4), (1,)
                    idx_ref,                                # VMEM tile (TB, 3) int32
                    tab_ref,                                # VMEM resident (Rp, 2*Dp) bf16 [prev | curr]
                    g1_ref, be1_ref, g2_ref, be2_ref,       # (3, 1, Dp) f32 resident
                    w1_ref, bw1_ref, w2_ref, bw2_ref,       # (3,Dp,Hp) bf16, (3,1,Hp), (3,Hp,Dp) bf16, (3,1,Dp)
                    sw_ref,                                 # (1, Dp) f32 resident
                    out_ref):                               # (TB, 1) f32
    TB = idx_ref.shape[0]
    Rp = tab_ref.shape[0]
    Dp = tab_ref.shape[1] // 2

    def gather(s):
        # One-hot MXU gather: (TB, Rp) bf16 @ (Rp, 2*Dp) bf16 -> (TB, 2*Dp) f32.
        idx_col = idx_ref[:, s:s + 1]                                   # (TB, 1) int32
        iota = lax.broadcasted_iota(jnp.int32, (TB, Rp), 1)
        onehot = jnp.where(iota == idx_col, 1.0, 0.0).astype(jnp.bfloat16)
        rows = jnp.dot(onehot, tab_ref[...], preferred_element_type=jnp.float32)
        return rows[:, :Dp], rows[:, Dp:]                               # prev, curr (TB, Dp) f32

    def mixer(s):
        prev, curr = gather(s)
        # --- token build (f32, VPU) ---
        x = [prev, curr, curr * prev, curr - prev]

        g1 = g1_ref[s]                                                  # (1, Dp)
        be1 = be1_ref[s]
        wt = [[wt_ref[s, i * NUM_TOKENS + j] for j in range(NUM_TOKENS)]
              for i in range(NUM_TOKENS)]
        bt = [bt_ref[s, i] for i in range(NUM_TOKENS)]

        # --- affine folded into the 4x4 cross-token mix + residual ---
        # y_i = x_i + g1 * (sum_j wt_ij * x_j) + (sum_j wt_ij) * be1 + bt_i
        y = []
        for i in range(NUM_TOKENS):
            m = wt[i][0] * x[0]
            for j in range(1, NUM_TOKENS):
                m = m + wt[i][j] * x[j]
            wsum = wt[i][0] + wt[i][1] + wt[i][2] + wt[i][3]            # scalar (SMEM/sreg)
            y.append(x[i] + g1 * m + (be1 * wsum + bt[i]))

        # --- channel MLP for all 4 tokens in one stacked matmul pair (bf16 in / f32 acc) ---
        Y = jnp.concatenate(y, axis=0)                                  # (4*TB, Dp)
        b2 = (Y * g2_ref[s] + be2_ref[s]).astype(jnp.bfloat16)
        h = jnp.dot(b2, w1_ref[s], preferred_element_type=jnp.float32) + bw1_ref[s]
        h = jax.nn.gelu(h, approximate=True).astype(jnp.bfloat16)
        z = jnp.dot(h, w2_ref[s], preferred_element_type=jnp.float32) + bw2_ref[s]

        # residual + mean over the 4 tokens
        z_sum = (y[0] + y[1] + y[2] + y[3]
                 + z[0:TB] + z[TB:2 * TB] + z[2 * TB:3 * TB] + z[3 * TB:4 * TB])
        return z_sum * (1.0 / NUM_TOKENS)

    user_e = mixer(0)
    item_e = mixer(1)
    time_e = mixer(2)

    # scoring head: sigmoid(Linear(D,1)(u * i * t)); padded channels masked by zero score_w
    prod = user_e * item_e * time_e                                     # (TB, Dp)
    logits = jnp.sum(prod * sw_ref[...], axis=-1, keepdims=True) + sb_ref[0]
    out_ref[...] = jax.nn.sigmoid(logits).astype(out_ref.dtype)


def _vmem_limit_bytes(Rp, Dp, Hp, tb):
    resident = (Rp * 2 * Dp * 2                     # embedding table, bf16
                + 3 * 2 * Dp * Hp * 2               # w1 + w2, bf16
                + 3 * (5 * Dp + Hp) * 4             # affines + bw1 + bw2, f32
                + Dp * 4)                           # score weight
    streamed = 2 * (tb * 3 * 4 + tb * 4)            # idx + out tiles, double-buffered
    live = 4 * tb * (10 * Dp + 3 * Hp) * 4 + tb * Rp * 4   # generous intermediate estimate
    est = resident + streamed + live + (8 << 20)
    return int(min(64 << 20, max(32 << 20, est)))


def light_tc_fused(idx, packed, *, tb):
    Bp = idx.shape[0]
    tab = packed["table"]
    Rp, two_dp = tab.shape
    Dp = two_dp // 2
    Hp = packed["w1"].shape[-1]

    smem = pl.BlockSpec(memory_space=pltpu.MemorySpace.SMEM)
    vmem = pl.BlockSpec(memory_space=pltpu.MemorySpace.VMEM)   # whole array, single-buffered
    idx_spec = pl.BlockSpec((tb, 3), lambda i: (i, 0))
    out_spec = pl.BlockSpec((tb, 1), lambda i: (i, 0))

    return pl.pallas_call(
        light_tc_kernel,
        out_shape=jax.ShapeDtypeStruct((Bp, 1), jnp.float32),
        grid=(Bp // tb,),
        in_specs=[
            smem, smem, smem,
            idx_spec, vmem,
            vmem, vmem, vmem, vmem,
            vmem, vmem, vmem, vmem,
            vmem,
        ],
        out_specs=out_spec,
        compiler_params=pltpu.CompilerParams(
            dimension_semantics=("parallel",),
            vmem_limit_bytes=_vmem_limit_bytes(Rp, Dp, Hp, tb)),
    )(packed["wt"], packed["bt"], packed["score_b"],
      idx, tab,
      packed["g1"], packed["be1"], packed["g2"], packed["be2"],
      packed["w1"], packed["bw1"], packed["w2"], packed["bw2"],
      packed["score_w"])


# ----------------------------------------------------------------------------
# Parameter init (deterministic, synthetic), packing, and full forward
# ----------------------------------------------------------------------------
def init_light_tc(key, num_user, num_item, num_time, dim):
    ks = jax.random.split(key, 8)
    k0, k1, k2 = jax.random.split(ks[6], 3)
    hidden = 4 * dim
    s = 0.1
    mixers = {
        "wt": jax.random.normal(k0, (3, NUM_TOKENS * NUM_TOKENS), jnp.float32) * s,
        "bt": jnp.zeros((3, NUM_TOKENS), jnp.float32),
        "g1": jnp.ones((3, 1, dim), jnp.float32),
        "be1": jnp.zeros((3, 1, dim), jnp.float32),
        "g2": jnp.ones((3, 1, dim), jnp.float32),
        "be2": jnp.zeros((3, 1, dim), jnp.float32),
        "w1": jax.random.normal(k1, (3, dim, hidden), jnp.float32) * s,
        "bw1": jnp.zeros((3, 1, hidden), jnp.float32),
        "w2": jax.random.normal(k2, (3, hidden, dim), jnp.float32) * s,
        "bw2": jnp.zeros((3, 1, dim), jnp.float32),
    }
    return {
        "user_embed": jax.random.normal(ks[0], (num_user, dim), jnp.float32),
        "item_embed": jax.random.normal(ks[1], (num_item, dim), jnp.float32),
        "time_embed": jax.random.normal(ks[2], (num_time, dim), jnp.float32),
        "prev_user":  jax.random.normal(ks[3], (num_user, dim), jnp.float32),
        "prev_item":  jax.random.normal(ks[4], (num_item, dim), jnp.float32),
        "prev_time":  jax.random.normal(ks[5], (num_time, dim), jnp.float32),
        "mixers":     mixers,
        "score_w":    jax.random.normal(ks[7], (1, dim), jnp.float32) * 0.1,
        "score_b":    jnp.zeros((1,), jnp.float32),
    }


def pack_light_tc_params(params):
    """Pad D/H to 128-multiples, fuse all prev/curr tables into one bf16 VMEM-resident table."""
    dim = params["user_embed"].shape[-1]
    hid = params["mixers"]["w1"].shape[-1]
    Dp = _round_up(dim, LANE)
    Hp = _round_up(hid, LANE)
    nu = params["user_embed"].shape[0]
    ni = params["item_embed"].shape[0]
    nt = params["time_embed"].shape[0]
    R = nu + ni + nt
    Rp = _round_up(R, LANE)

    def pad_cols(a, n):
        return jnp.pad(a, ((0, 0), (0, n - a.shape[-1])))

    def pad_last(a, n):
        return jnp.pad(a, [(0, 0)] * (a.ndim - 1) + [(0, n - a.shape[-1])])

    prev_cat = jnp.concatenate([params["prev_user"], params["prev_item"], params["prev_time"]], axis=0)
    curr_cat = jnp.concatenate([params["user_embed"], params["item_embed"], params["time_embed"]], axis=0)
    table = jnp.concatenate([pad_cols(prev_cat, Dp), pad_cols(curr_cat, Dp)], axis=1)   # (R, 2*Dp)
    table = jnp.pad(table, ((0, Rp - R), (0, 0))).astype(jnp.bfloat16)

    m = params["mixers"]
    w1 = jnp.pad(m["w1"], ((0, 0), (0, Dp - dim), (0, Hp - hid))).astype(jnp.bfloat16)
    w2 = jnp.pad(m["w2"], ((0, 0), (0, Hp - hid), (0, Dp - dim))).astype(jnp.bfloat16)

    return {
        "table": table,
        "wt": m["wt"], "bt": m["bt"],
        "g1": pad_last(m["g1"], Dp), "be1": pad_last(m["be1"], Dp),
        "g2": pad_last(m["g2"], Dp), "be2": pad_last(m["be2"], Dp),
        "w1": w1, "bw1": pad_last(m["bw1"], Hp),
        "w2": w2, "bw2": pad_last(m["bw2"], Dp),
        "score_w": pad_last(params["score_w"], Dp),   # zero pad masks padded channels
        "score_b": params["score_b"],
        "offsets": (0, nu, nu + ni),
    }


def light_tc_forward(packed, user, item, time, *, block_b=256):
    B = user.shape[0]
    off_u, off_i, off_t = packed["offsets"]
    # batch tile: multiple of 8 sublanes, capped at block_b; pad B so the grid is exact
    TB = min(block_b, _round_up(max(B, 1), 8))
    Bp = _round_up(B, TB)

    idx = jnp.stack([user.astype(jnp.int32) + off_u,
                     item.astype(jnp.int32) + off_i,
                     time.astype(jnp.int32) + off_t], axis=1)            # (B, 3)
    if Bp != B:
        idx = jnp.pad(idx, ((0, Bp - B), (0, 0)))                        # pad rows -> row 0 gather

    pred = light_tc_fused(idx, packed, tb=TB)
    return pred[:B, 0]   # .squeeze()


if __name__ == "__main__":
    NUM_USER, NUM_ITEM, NUM_TIME, DIM, B = 10, 12, 6, 32, 8

    key = jax.random.PRNGKey(0)
    kp, ku, ki, kt = jax.random.split(key, 4)
    params = init_light_tc(kp, NUM_USER, NUM_ITEM, NUM_TIME, DIM)
    packed = pack_light_tc_params(params)

    user = jax.random.randint(ku, (B,), 0, NUM_USER)
    item = jax.random.randint(ki, (B,), 0, NUM_ITEM)
    time = jax.random.randint(kt, (B,), 0, NUM_TIME)

    fwd = jax.jit(functools.partial(light_tc_forward, packed))
    pred = fwd(user, item, time)
    jax.block_until_ready(pred)

    assert pred.shape == (B,)
    assert bool(jnp.all(jnp.isfinite(pred)))
    print("KERNEL_OK")
</pallas_src>

<mosaic_0001>
module attributes {stable_mosaic.version = 11 : i64} {
  func.func @light_tc_kernel(%arg0: i32, %arg1: memref<3x16xf32, #tpu.memory_space<smem>>, %arg2: memref<3x4xf32, #tpu.memory_space<smem>>, %arg3: memref<1xf32, #tpu.memory_space<smem>>, %arg4: memref<8x3xi32, #tpu.memory_space<vmem>>, %arg5: memref<128x256xbf16, #tpu.memory_space<vmem>>, %arg6: memref<3x1x128xf32, #tpu.memory_space<vmem>>, %arg7: memref<3x1x128xf32, #tpu.memory_space<vmem>>, %arg8: memref<3x1x128xf32, #tpu.memory_space<vmem>>, %arg9: memref<3x1x128xf32, #tpu.memory_space<vmem>>, %arg10: memref<3x128x128xbf16, #tpu.memory_space<vmem>>, %arg11: memref<3x1x128xf32, #tpu.memory_space<vmem>>, %arg12: memref<3x128x128xbf16, #tpu.memory_space<vmem>>, %arg13: memref<3x1x128xf32, #tpu.memory_space<vmem>>, %arg14: memref<1x128xf32, #tpu.memory_space<vmem>>, %arg15: memref<8x1xf32, #tpu.memory_space<vmem>>) attributes {dimension_semantics = [#tpu.dimension_semantics<parallel>], iteration_bounds = array<i64: 1>, scalar_prefetch = 0 : i64, scratch_operands = 0 : i64, tpu.core_type = #tpu.core_type<tc>, window_params = [{transform_indices = @transform_0, window_bounds = array<i64: 3, 16>}, {transform_indices = @transform_1, window_bounds = array<i64: 3, 4>}, {transform_indices = @transform_2, window_bounds = array<i64: 1>}, {transform_indices = @transform_3, window_bounds = array<i64: 8, 3>}, {pipeline_mode = #tpu.pipeline_mode<synchronous>, transform_indices = @transform_4, window_bounds = array<i64: 128, 256>}, {pipeline_mode = #tpu.pipeline_mode<synchronous>, transform_indices = @transform_5, window_bounds = array<i64: 3, 1, 128>}, {pipeline_mode = #tpu.pipeline_mode<synchronous>, transform_indices = @transform_6, window_bounds = array<i64: 3, 1, 128>}, {pipeline_mode = #tpu.pipeline_mode<synchronous>, transform_indices = @transform_7, window_bounds = array<i64: 3, 1, 128>}, {pipeline_mode = #tpu.pipeline_mode<synchronous>, transform_indices = @transform_8, window_bounds = array<i64: 3, 1, 128>}, {pipeline_mode = #tpu.pipeline_mode<synchronous>, transform_indices = @transform_9, window_bounds = array<i64: 3, 128, 128>}, {pipeline_mode = #tpu.pipeline_mode<synchronous>, transform_indices = @transform_10, window_bounds = array<i64: 3, 1, 128>}, {pipeline_mode = #tpu.pipeline_mode<synchronous>, transform_indices = @transform_11, window_bounds = array<i64: 3, 128, 128>}, {pipeline_mode = #tpu.pipeline_mode<synchronous>, transform_indices = @transform_12, window_bounds = array<i64: 3, 1, 128>}, {pipeline_mode = #tpu.pipeline_mode<synchronous>, transform_indices = @transform_13, window_bounds = array<i64: 1, 128>}, {transform_indices = @transform_14, window_bounds = array<i64: 8, 1>}]} {
    %c0 = arith.constant 0 : index
    %c0_0 = arith.constant 0 : index
    %0 = vector.load %arg4[%c0, %c0_0] : memref<8x3xi32, #tpu.memory_space<vmem>>, vector<8x1xi32>
    %1 = tpu.iota {dimensions = array<i32: 1>} : vector<8x128xi32>
    %2 = vector.broadcast %0 : vector<8x1xi32> to vector<8x128xi32>
    %3 = arith.cmpi eq, %1, %2 : vector<8x128xi32>
    %cst = arith.constant 1.000000e+00 : f32
    %cst_1 = arith.constant 0.000000e+00 : f32
    %4 = vector.broadcast %cst : f32 to vector<8x128xf32>
    %5 = vector.broadcast %cst_1 : f32 to vector<8x128xf32>
    %6 = arith.select %3, %4, %5 : vector<8x128xi1>, vector<8x128xf32>
    %7 = arith.truncf %6 : vector<8x128xf32> to vector<8x128xbf16>
    %c0_2 = arith.constant 0 : index
    %c0_3 = arith.constant 0 : index
    %8 = vector.load %arg5[%c0_2, %c0_3] : memref<128x256xbf16, #tpu.memory_space<vmem>>, vector<128x256xbf16>
    %cst_4 = arith.constant dense<0.000000e+00> : vector<8x256xf32>
    %9 = tpu.matmul %7, %8, %cst_4 {dimension_numbers = #tpu.dot_dimension_numbers<[1], [0], [0], [1], [0, 0, 1, 1], [], []>} : vector<8x128xbf16>, vector<128x256xbf16>, vector<8x256xf32> -> vector<8x256xf32>
    %10 = vector.extract_strided_slice %9 {offsets = [0, 0], sizes = [8, 128], strides = [1, 1]} : vector<8x256xf32> to vector<8x128xf32>
    %11 = vector.extract_strided_slice %9 {offsets = [0, 128], sizes = [8, 128], strides = [1, 1]} : vector<8x256xf32> to vector<8x128xf32>
    %12 = arith.mulf %11, %10 : vector<8x128xf32>
    %13 = arith.subf %11, %10 : vector<8x128xf32>
    %c0_5 = arith.constant 0 : index
    %c0_6 = arith.constant 0 : index
    %c0_7 = arith.constant 0 : index
    %14 = vector.load %arg6[%c0_5, %c0_6, %c0_7] : memref<3x1x128xf32, #tpu.memory_space<vmem>>, vector<1x1x128xf32>
    %15 = vector.shape_cast %14 : vector<1x1x128xf32> to vector<1x128xf32>
    %c0_8 = arith.constant 0 : index
    %c0_9 = arith.constant 0 : index
    %c0_10 = arith.constant 0 : index
    %16 = vector.load %arg7[%c0_8, %c0_9, %c0_10] : memref<3x1x128xf32, #tpu.memory_space<vmem>>, vector<1x1x128xf32>
    %17 = vector.shape_cast %16 : vector<1x1x128xf32> to vector<1x128xf32>
    %c0_11 = arith.constant 0 : index
    %c0_12 = arith.constant 0 : index
    %18 = memref.load %arg1[%c0_11, %c0_12] : memref<3x16xf32, #tpu.memory_space<smem>>
    %c0_13 = arith.constant 0 : index
    %c1 = arith.constant 1 : index
    %19 = memref.load %arg1[%c0_13, %c1] : memref<3x16xf32, #tpu.memory_space<smem>>
    %c0_14 = arith.constant 0 : index
    %c2 = arith.constant 2 : index
    %20 = memref.load %arg1[%c0_14, %c2] : memref<3x16xf32, #tpu.memory_space<smem>>
    %c0_15 = arith.constant 0 : index
    %c3 = arith.constant 3 : index
    %21 = memref.load %arg1[%c0_15, %c3] : memref<3x16xf32, #tpu.memory_space<smem>>
    %c0_16 = arith.constant 0 : index
    %c4 = arith.constant 4 : index
    %22 = memref.load %arg1[%c0_16, %c4] : memref<3x16xf32, #tpu.memory_space<smem>>
    %c0_17 = arith.constant 0 : index
    %c5 = arith.constant 5 : index
    %23 = memref.load %arg1[%c0_17, %c5] : memref<3x16xf32, #tpu.memory_space<smem>>
    %c0_18 = arith.constant 0 : index
    %c6 = arith.constant 6 : index
    %24 = memref.load %arg1[%c0_18, %c6] : memref<3x16xf32, #tpu.memory_space<smem>>
    %c0_19 = arith.constant 0 : index
    %c7 = arith.constant 7 : index
    %25 = memref.load %arg1[%c0_19, %c7] : memref<3x16xf32, #tpu.memory_space<smem>>
    %c0_20 = arith.constant 0 : index
    %c8 = arith.constant 8 : index
    %26 = memref.load %arg1[%c0_20, %c8] : memref<3x16xf32, #tpu.memory_space<smem>>
    %c0_21 = arith.constant 0 : index
    %c9 = arith.constant 9 : index
    %27 = memref.load %arg1[%c0_21, %c9] : memref<3x16xf32, #tpu.memory_space<smem>>
    %c0_22 = arith.constant 0 : index
    %c10 = arith.constant 10 : index
    %28 = memref.load %arg1[%c0_22, %c10] : memref<3x16xf32, #tpu.memory_space<smem>>
    %c0_23 = arith.constant 0 : index
    %c11 = arith.constant 11 : index
    %29 = memref.load %arg1[%c0_23, %c11] : memref<3x16xf32, #tpu.memory_space<smem>>
    %c0_24 = arith.constant 0 : index
    %c12 = arith.constant 12 : index
    %30 = memref.load %arg1[%c0_24, %c12] : memref<3x16xf32, #tpu.memory_space<smem>>
    %c0_25 = arith.constant 0 : index
    %c13 = arith.constant 13 : index
    %31 = memref.load %arg1[%c0_25, %c13] : memref<3x16xf32, #tpu.memory_space<smem>>
    %c0_26 = arith.constant 0 : index
    %c14 = arith.constant 14 : index
    %32 = memref.load %arg1[%c0_26, %c14] : memref<3x16xf32, #tpu.memory_space<smem>>
    %c0_27 = arith.constant 0 : index
    %c15 = arith.constant 15 : index
    %33 = memref.load %arg1[%c0_27, %c15] : memref<3x16xf32, #tpu.memory_space<smem>>
    %c0_28 = arith.constant 0 : index
    %c0_29 = arith.constant 0 : index
    %34 = memref.load %arg2[%c0_28, %c0_29] : memref<3x4xf32, #tpu.memory_space<smem>>
    %c0_30 = arith.constant 0 : index
    %c1_31 = arith.constant 1 : index
    %35 = memref.load %arg2[%c0_30, %c1_31] : memref<3x4xf32, #tpu.memory_space<smem>>
    %c0_32 = arith.constant 0 : index
    %c2_33 = arith.constant 2 : index
    %36 = memref.load %arg2[%c0_32, %c2_33] : memref<3x4xf32, #tpu.memory_space<smem>>
    %c0_34 = arith.constant 0 : index
    %c3_35 = arith.constant 3 : index
    %37 = memref.load %arg2[%c0_34, %c3_35] : memref<3x4xf32, #tpu.memory_space<smem>>
    %38 = vector.broadcast %18 : f32 to vector<8x128xf32>
    %39 = arith.mulf %38, %10 : vector<8x128xf32>
    %40 = vector.broadcast %19 : f32 to vector<8x128xf32>
    %41 = arith.mulf %40, %11 : vector<8x128xf32>
    %42 = arith.addf %39, %41 : vector<8x128xf32>
    %43 = vector.broadcast %20 : f32 to vector<8x128xf32>
    %44 = arith.mulf %43, %12 : vector<8x128xf32>
    %45 = arith.addf %42, %44 : vector<8x128xf32>
    %46 = vector.broadcast %21 : f32 to vector<8x128xf32>
    %47 = arith.mulf %46, %13 : vector<8x128xf32>
    %48 = arith.addf %45, %47 : vector<8x128xf32>
    %49 = arith.addf %18, %19 : f32
    %50 = arith.addf %49, %20 : f32
    %51 = arith.addf %50, %21 : f32
    %52 = vector.broadcast %15 : vector<1x128xf32> to vector<8x128xf32>
    %53 = arith.mulf %52, %48 : vector<8x128xf32>
    %54 = arith.addf %10, %53 : vector<8x128xf32>
    %55 = vector.broadcast %51 : f32 to vector<1x128xf32>
    %56 = arith.mulf %17, %55 : vector<1x128xf32>
    %57 = vector.broadcast %34 : f32 to vector<1x128xf32>
    %58 = arith.addf %56, %57 : vector<1x128xf32>
    %59 = vector.broadcast %58 : vector<1x128xf32> to vector<8x128xf32>
    %60 = arith.addf %54, %59 : vector<8x128xf32>
    %61 = vector.broadcast %22 : f32 to vector<8x128xf32>
    %62 = arith.mulf %61, %10 : vector<8x128xf32>
    %63 = vector.broadcast %23 : f32 to vector<8x128xf32>
    %64 = arith.mulf %63, %11 : vector<8x128xf32>
    %65 = arith.addf %62, %64 : vector<8x128xf32>
    %66 = vector.broadcast %24 : f32 to vector<8x128xf32>
    %67 = arith.mulf %66, %12 : vector<8x128xf32>
    %68 = arith.addf %65, %67 : vector<8x128xf32>
    %69 = vector.broadcast %25 : f32 to vector<8x128xf32>
    %70 = arith.mulf %69, %13 : vector<8x128xf32>
    %71 = arith.addf %68, %70 : vector<8x128xf32>
    %72 = arith.addf %22, %23 : f32
    %73 = arith.addf %72, %24 : f32
    %74 = arith.addf %73, %25 : f32
    %75 = vector.broadcast %15 : vector<1x128xf32> to vector<8x128xf32>
    %76 = arith.mulf %75, %71 : vector<8x128xf32>
    %77 = arith.addf %11, %76 : vector<8x128xf32>
    %78 = vector.broadcast %74 : f32 to vector<1x128xf32>
    %79 = arith.mulf %17, %78 : vector<1x128xf32>
    %80 = vector.broadcast %35 : f32 to vector<1x128xf32>
    %81 = arith.addf %79, %80 : vector<1x128xf32>
    %82 = vector.broadcast %81 : vector<1x128xf32> to vector<8x128xf32>
    %83 = arith.addf %77, %82 : vector<8x128xf32>
    %84 = vector.broadcast %26 : f32 to vector<8x128xf32>
    %85 = arith.mulf %84, %10 : vector<8x128xf32>
    %86 = vector.broadcast %27 : f32 to vector<8x128xf32>
    %87 = arith.mulf %86, %11 : vector<8x128xf32>
    %88 = arith.addf %85, %87 : vector<8x128xf32>
    %89 = vector.broadcast %28 : f32 to vector<8x128xf32>
    %90 = arith.mulf %89, %12 : vector<8x128xf32>
    %91 = arith.addf %88, %90 : vector<8x128xf32>
    %92 = vector.broadcast %29 : f32 to vector<8x128xf32>
    %93 = arith.mulf %92, %13 : vector<8x128xf32>
    %94 = arith.addf %91, %93 : vector<8x128xf32>
    %95 = arith.addf %26, %27 : f32
    %96 = arith.addf %95, %28 : f32
    %97 = arith.addf %96, %29 : f32
    %98 = vector.broadcast %15 : vector<1x128xf32> to vector<8x128xf32>
    %99 = arith.mulf %98, %94 : vector<8x128xf32>
    %100 = arith.addf %12, %99 : vector<8x128xf32>
    %101 = vector.broadcast %97 : f32 to vector<1x128xf32>
    %102 = arith.mulf %17, %101 : vector<1x128xf32>
    %103 = vector.broadcast %36 : f32 to vector<1x128xf32>
    %104 = arith.addf %102, %103 : vector<1x128xf32>
    %105 = vector.broadcast %104 : vector<1x128xf32> to vector<8x128xf32>
    %106 = arith.addf %100, %105 : vector<8x128xf32>
    %107 = vector.broadcast %30 : f32 to vector<8x128xf32>
    %108 = arith.mulf %107, %10 : vector<8x128xf32>
    %109 = vector.broadcast %31 : f32 to vector<8x128xf32>
    %110 = arith.mulf %109, %11 : vector<8x128xf32>
    %111 = arith.addf %108, %110 : vector<8x128xf32>
    %112 = vector.broadcast %32 : f32 to vector<8x128xf32>
    %113 = arith.mulf %112, %12 : vector<8x128xf32>
    %114 = arith.addf %111, %113 : vector<8x128xf32>
    %115 = vector.broadcast %33 : f32 to vector<8x128xf32>
    %116 = arith.mulf %115, %13 : vector<8x128xf32>
    %117 = arith.addf %114, %116 : vector<8x128xf32>
    %118 = arith.addf %30, %31 : f32
    %119 = arith.addf %118, %32 : f32
    %120 = arith.addf %119, %33 : f32
    %121 = vector.broadcast %15 : vector<1x128xf32> to vector<8x128xf32>
    %122 = arith.mulf %121, %117 : vector<8x128xf32>
    %123 = arith.addf %13, %122 : vector<8x128xf32>
    %124 = vector.broadcast %120 : f32 to vector<1x128xf32>
    %125 = arith.mulf %17, %124 : vector<1x128xf32>
    %126 = vector.broadcast %37 : f32 to vector<1x128xf32>
    %127 = arith.addf %125, %126 : vector<1x128xf32>
    %128 = vector.broadcast %127 : vector<1x128xf32> to vector<8x128xf32>
    %129 = arith.addf %123, %128 : vector<8x128xf32>
    %130 = tpu.concatenate %60, %83, %106, %129 in 0 : vector<8x128xf32>, vector<8x128xf32>, vector<8x128xf32>, vector<8x128xf32> -> vector<32x128xf32>
    %c0_36 = arith.constant 0 : index
    %c0_37 = arith.constant 0 : index
    %c0_38 = arith.constant 0 : index
    %131 = vector.load %arg8[%c0_36, %c0_37, %c0_38] : memref<3x1x128xf32, #tpu.memory_space<vmem>>, vector<1x1x128xf32>
    %132 = vector.shape_cast %131 : vector<1x1x128xf32> to vector<1x128xf32>
    %133 = vector.broadcast %132 : vector<1x128xf32> to vector<32x128xf32>
    %134 = arith.mulf %130, %133 : vector<32x128xf32>
    %c0_39 = arith.constant 0 : index
    %c0_40 = arith.constant 0 : index
    %c0_41 = arith.constant 0 : index
    %135 = vector.load %arg9[%c0_39, %c0_40, %c0_41] : memref<3x1x128xf32, #tpu.memory_space<vmem>>, vector<1x1x128xf32>
    %136 = vector.shape_cast %135 : vector<1x1x128xf32> to vector<1x128xf32>
    %137 = vector.broadcast %136 : vector<1x128xf32> to vector<32x128xf32>
    %138 = arith.addf %134, %137 : vector<32x128xf32>
    %139 = arith.truncf %138 : vector<32x128xf32> to vector<32x128xbf16>
    %c0_42 = arith.constant 0 : index
    %c0_43 = arith.constant 0 : index
    %c0_44 = arith.constant 0 : index
    %140 = vector.load %arg10[%c0_42, %c0_43, %c0_44] : memref<3x128x128xbf16, #tpu.memory_space<vmem>>, vector<1x128x128xbf16>
    %141 = vector.shape_cast %140 : vector<1x128x128xbf16> to vector<128x128xbf16>
    %cst_45 = arith.constant dense<0.000000e+00> : vector<32x128xf32>
    %142 = tpu.matmul %139, %141, %cst_45 {dimension_numbers = #tpu.dot_dimension_numbers<[1], [0], [0], [1], [0, 0, 1, 1], [], []>} : vector<32x128xbf16>, vector<128x128xbf16>, vector<32x128xf32> -> vector<32x128xf32>
    %c0_46 = arith.constant 0 : index
    %c0_47 = arith.constant 0 : index
    %c0_48 = arith.constant 0 : index
    %143 = vector.load %arg11[%c0_46, %c0_47, %c0_48] : memref<3x1x128xf32, #tpu.memory_space<vmem>>, vector<1x1x128xf32>
    %144 = vector.shape_cast %143 : vector<1x1x128xf32> to vector<1x128xf32>
    %145 = vector.broadcast %144 : vector<1x128xf32> to vector<32x128xf32>
    %146 = arith.addf %142, %145 : vector<32x128xf32>
    %147 = arith.mulf %146, %146 : vector<32x128xf32>
    %148 = arith.mulf %146, %147 : vector<32x128xf32>
    %cst_49 = arith.constant 4.471500e-02 : f32
    %149 = vector.broadcast %cst_49 : f32 to vector<32x128xf32>
    %150 = arith.mulf %149, %148 : vector<32x128xf32>
    %151 = arith.addf %146, %150 : vector<32x128xf32>
    %cst_50 = arith.constant 0.797884583 : f32
    %152 = vector.broadcast %cst_50 : f32 to vector<32x128xf32>
    %153 = arith.mulf %152, %151 : vector<32x128xf32>
    %154 = math.tanh %153 : vector<32x128xf32>
    %cst_51 = arith.constant 1.000000e+00 : f32
    %155 = vector.broadcast %cst_51 : f32 to vector<32x128xf32>
    %156 = arith.addf %155, %154 : vector<32x128xf32>
    %cst_52 = arith.constant 5.000000e-01 : f32
    %157 = vector.broadcast %cst_52 : f32 to vector<32x128xf32>
    %158 = arith.mulf %157, %156 : vector<32x128xf32>
    %159 = arith.mulf %146, %158 : vector<32x128xf32>
    %160 = arith.truncf %159 : vector<32x128xf32> to vector<32x128xbf16>
    %c0_53 = arith.constant 0 : index
    %c0_54 = arith.constant 0 : index
    %c0_55 = arith.constant 0 : index
    %161 = vector.load %arg12[%c0_53, %c0_54, %c0_55] : memref<3x128x128xbf16, #tpu.memory_space<vmem>>, vector<1x128x128xbf16>
    %162 = vector.shape_cast %161 : vector<1x128x128xbf16> to vector<128x128xbf16>
    %cst_56 = arith.constant dense<0.000000e+00> : vector<32x128xf32>
    %163 = tpu.matmul %160, %162, %cst_56 {dimension_numbers = #tpu.dot_dimension_numbers<[1], [0], [0], [1], [0, 0, 1, 1], [], []>} : vector<32x128xbf16>, vector<128x128xbf16>, vector<32x128xf32> -> vector<32x128xf32>
    %c0_57 = arith.constant 0 : index
    %c0_58 = arith.constant 0 : index
    %c0_59 = arith.constant 0 : index
    %164 = vector.load %arg13[%c0_57, %c0_58, %c0_59] : memref<3x1x128xf32, #tpu.memory_space<vmem>>, vector<1x1x128xf32>
    %165 = vector.shape_cast %164 : vector<1x1x128xf32> to vector<1x128xf32>
    %166 = vector.broadcast %165 : vector<1x128xf32> to vector<32x128xf32>
    %167 = arith.addf %163, %166 : vector<32x128xf32>
    %168 = arith.addf %60, %83 : vector<8x128xf32>
    %169 = arith.addf %168, %106 : vector<8x128xf32>
    %170 = arith.addf %169, %129 : vector<8x128xf32>
    %171 = vector.extract_strided_slice %167 {offsets = [0, 0], sizes = [8, 128], strides = [1, 1]} : vector<32x128xf32> to vector<8x128xf32>
    %172 = arith.addf %170, %171 : vector<8x128xf32>
    %173 = vector.extract_strided_slice %167 {offsets = [8, 0], sizes = [8, 128], strides = [1, 1]} : vector<32x128xf32> to vector<8x128xf32>
    %174 = arith.addf %172, %173 : vector<8x128xf32>
    %175 = vector.extract_strided_slice %167 {offsets = [16, 0], sizes = [8, 128], strides = [1, 1]} : vector<32x128xf32> to vector<8x128xf32>
    %176 = arith.addf %174, %175 : vector<8x128xf32>
    %177 = vector.extract_strided_slice %167 {offsets = [24, 0], sizes = [8, 128], strides = [1, 1]} : vector<32x128xf32> to vector<8x128xf32>
    %178 = arith.addf %176, %177 : vector<8x128xf32>
    %cst_60 = arith.constant 2.500000e-01 : f32
    %179 = vector.broadcast %cst_60 : f32 to vector<8x128xf32>
    %180 = arith.mulf %178, %179 : vector<8x128xf32>
    %c0_61 = arith.constant 0 : index
    %c1_62 = arith.constant 1 : index
    %181 = vector.load %arg4[%c0_61, %c1_62] : memref<8x3xi32, #tpu.memory_space<vmem>>, vector<8x1xi32>
    %182 = tpu.iota {dimensions = array<i32: 1>} : vector<8x128xi32>
    %183 = vector.broadcast %181 : vector<8x1xi32> to vector<8x128xi32>
    %184 = arith.cmpi eq, %182, %183 : vector<8x128xi32>
    %cst_63 = arith.constant 1.000000e+00 : f32
    %cst_64 = arith.constant 0.000000e+00 : f32
    %185 = vector.broadcast %cst_63 : f32 to vector<8x128xf32>
    %186 = vector.broadcast %cst_64 : f32 to vector<8x128xf32>
    %187 = arith.select %184, %185, %186 : vector<8x128xi1>, vector<8x128xf32>
    %188 = arith.truncf %187 : vector<8x128xf32> to vector<8x128xbf16>
    %c0_65 = arith.constant 0 : index
    %c0_66 = arith.constant 0 : index
    %189 = vector.load %arg5[%c0_65, %c0_66] : memref<128x256xbf16, #tpu.memory_space<vmem>>, vector<128x256xbf16>
    %cst_67 = arith.constant dense<0.000000e+00> : vector<8x256xf32>
    %190 = tpu.matmul %188, %189, %cst_67 {dimension_numbers = #tpu.dot_dimension_numbers<[1], [0], [0], [1], [0, 0, 1, 1], [], []>} : vector<8x128xbf16>, vector<128x256xbf16>, vector<8x256xf32> -> vector<8x256xf32>
    %191 = vector.extract_strided_slice %190 {offsets = [0, 0], sizes = [8, 128], strides = [1, 1]} : vector<8x256xf32> to vector<8x128xf32>
    %192 = vector.extract_strided_slice %190 {offsets = [0, 128], sizes = [8, 128], strides = [1, 1]} : vector<8x256xf32> to vector<8x128xf32>
    %193 = arith.mulf %192, %191 : vector<8x128xf32>
    %194 = arith.subf %192, %191 : vector<8x128xf32>
    %c1_68 = arith.constant 1 : index
    %c0_69 = arith.constant 0 : index
    %c0_70 = arith.constant 0 : index
    %195 = vector.load %arg6[%c1_68, %c0_69, %c0_70] : memref<3x1x128xf32, #tpu.memory_space<vmem>>, vector<1x1x128xf32>
    %196 = vector.shape_cast %195 : vector<1x1x128xf32> to vector<1x128xf32>
    %c1_71 = arith.constant 1 : index
    %c0_72 = arith.constant 0 : index
    %c0_73 = arith.constant 0 : index
    %197 = vector.load %arg7[%c1_71, %c0_72, %c0_73] : memref<3x1x128xf32, #tpu.memory_space<vmem>>, vector<1x1x128xf32>
    %198 = vector.shape_cast %197 : vector<1x1x128xf32> to vector<1x128xf32>
    %c1_74 = arith.constant 1 : index
    %c0_75 = arith.constant 0 : index
    %199 = memref.load %arg1[%c1_74, %c0_75] : memref<3x16xf32, #tpu.memory_space<smem>>
    %c1_76 = arith.constant 1 : index
    %c1_77 = arith.constant 1 : index
    %200 = memref.load %arg1[%c1_76, %c1_77] : memref<3x16xf32, #tpu.memory_space<smem>>
    %c1_78 = arith.constant 1 : index
    %c2_79 = arith.constant 2 : index
    %201 = memref.load %arg1[%c1_78, %c2_79] : memref<3x16xf32, #tpu.memory_space<smem>>
    %c1_80 = arith.constant 1 : index
    %c3_81 = arith.constant 3 : index
    %202 = memref.load %arg1[%c1_80, %c3_81] : memref<3x16xf32, #tpu.memory_space<smem>>
    %c1_82 = arith.constant 1 : index
    %c4_83 = arith.constant 4 : index
    %203 = memref.load %arg1[%c1_82, %c4_83] : memref<3x16xf32, #tpu.memory_space<smem>>
    %c1_84 = arith.constant 1 : index
    %c5_85 = arith.constant 5 : index
    %204 = memref.load %arg1[%c1_84, %c5_85] : memref<3x16xf32, #tpu.memory_space<smem>>
    %c1_86 = arith.constant 1 : index
    %c6_87 = arith.constant 6 : index
    %205 = memref.load %arg1[%c1_86, %c6_87] : memref<3x16xf32, #tpu.memory_space<smem>>
    %c1_88 = arith.constant 1 : index
    %c7_89 = arith.constant 7 : index
    %206 = memref.load %arg1[%c1_88, %c7_89] : memref<3x16xf32, #tpu.memory_space<smem>>
    %c1_90 = arith.constant 1 : index
    %c8_91 = arith.constant 8 : index
    %207 = memref.load %arg1[%c1_90, %c8_91] : memref<3x16xf32, #tpu.memory_space<smem>>
    %c1_92 = arith.constant 1 : index
    %c9_93 = arith.constant 9 : index
    %208 = memref.load %arg1[%c1_92, %c9_93] : memref<3x16xf32, #tpu.memory_space<smem>>
    %c1_94 = arith.constant 1 : index
    %c10_95 = arith.constant 10 : index
    %209 = memref.load %arg1[%c1_94, %c10_95] : memref<3x16xf32, #tpu.memory_space<smem>>
    %c1_96 = arith.constant 1 : index
    %c11_97 = arith.constant 11 : index
    %210 = memref.load %arg1[%c1_96, %c11_97] : memref<3x16xf32, #tpu.memory_space<smem>>
    %c1_98 = arith.constant 1 : index
    %c12_99 = arith.constant 12 : index
    %211 = memref.load %arg1[%c1_98, %c12_99] : memref<3x16xf32, #tpu.memory_space<smem>>
    %c1_100 = arith.constant 1 : index
    %c13_101 = arith.constant 13 : index
    %212 = memref.load %arg1[%c1_100, %c13_101] : memref<3x16xf32, #tpu.memory_space<smem>>
    %c1_102 = arith.constant 1 : index
    %c14_103 = arith.constant 14 : index
    %213 = memref.load %arg1[%c1_102, %c14_103] : memref<3x16xf32, #tpu.memory_space<smem>>
    %c1_104 = arith.constant 1 : index
    %c15_105 = arith.constant 15 : index
    %214 = memref.load %arg1[%c1_104, %c15_105] : memref<3x16xf32, #tpu.memory_space<smem>>
    %c1_106 = arith.constant 1 : index
    %c0_107 = arith.constant 0 : index
    %215 = memref.load %arg2[%c1_106, %c0_107] : memref<3x4xf32, #tpu.memory_space<smem>>
    %c1_108 = arith.constant 1 : index
    %c1_109 = arith.constant 1 : index
    %216 = memref.load %arg2[%c1_108, %c1_109] : memref<3x4xf32, #tpu.memory_space<smem>>
    %c1_110 = arith.constant 1 : index
    %c2_111 = arith.constant 2 : index
    %217 = memref.load %arg2[%c1_110, %c2_111] : memref<3x4xf32, #tpu.memory_space<smem>>
    %c1_112 = arith.constant 1 : index
    %c3_113 = arith.constant 3 : index
    %218 = memref.load %arg2[%c1_112, %c3_113] : memref<3x4xf32, #tpu.memory_space<smem>>
    %219 = vector.broadcast %199 : f32 to vector<8x128xf32>
    %220 = arith.mulf %219, %191 : vector<8x128xf32>
    %221 = vector.broadcast %200 : f32 to vector<8x128xf32>
    %222 = arith.mulf %221, %192 : vector<8x128xf32>
    %223 = arith.addf %220, %222 : vector<8x128xf32>
    %224 = vector.broadcast %201 : f32 to vector<8x128xf32>
    %225 = arith.mulf %224, %193 : vector<8x128xf32>
    %226 = arith.addf %223, %225 : vector<8x128xf32>
    %227 = vector.broadcast %202 : f32 to vector<8x128xf32>
    %228 = arith.mulf %227, %194 : vector<8x128xf32>
    %229 = arith.addf %226, %228 : vector<8x128xf32>
    %230 = arith.addf %199, %200 : f32
    %231 = arith.addf %230, %201 : f32
    %232 = arith.addf %231, %202 : f32
    %233 = vector.broadcast %196 : vector<1x128xf32> to vector<8x128xf32>
    %234 = arith.mulf %233, %229 : vector<8x128xf32>
    %235 = arith.addf %191, %234 : vector<8x128xf32>
    %236 = vector.broadcast %232 : f32 to vector<1x128xf32>
    %237 = arith.mulf %198, %236 : vector<1x128xf32>
    %238 = vector.broadcast %215 : f32 to vector<1x128xf32>
    %239 = arith.addf %237, %238 : vector<1x128xf32>
    %240 = vector.broadcast %239 : vector<1x128xf32> to vector<8x128xf32>
    %241 = arith.addf %235, %240 : vector<8x128xf32>
    %242 = vector.broadcast %203 : f32 to vector<8x128xf32>
    %243 = arith.mulf %242, %191 : vector<8x128xf32>
    %244 = vector.broadcast %204 : f32 to vector<8x128xf32>
    %245 = arith.mulf %244, %192 : vector<8x128xf32>
    %246 = arith.addf %243, %245 : vector<8x128xf32>
    %247 = vector.broadcast %205 : f32 to vector<8x128xf32>
    %248 = arith.mulf %247, %193 : vector<8x128xf32>
    %249 = arith.addf %246, %248 : vector<8x128xf32>
    %250 = vector.broadcast %206 : f32 to vector<8x128xf32>
    %251 = arith.mulf %250, %194 : vector<8x128xf32>
    %252 = arith.addf %249, %251 : vector<8x128xf32>
    %253 = arith.addf %203, %204 : f32
    %254 = arith.addf %253, %205 : f32
    %255 = arith.addf %254, %206 : f32
    %256 = vector.broadcast %196 : vector<1x128xf32> to vector<8x128xf32>
    %257 = arith.mulf %256, %252 : vector<8x128xf32>
    %258 = arith.addf %192, %257 : vector<8x128xf32>
    %259 = vector.broadcast %255 : f32 to vector<1x128xf32>
    %260 = arith.mulf %198, %259 : vector<1x128xf32>
    %261 = vector.broadcast %216 : f32 to vector<1x128xf32>
    %262 = arith.addf %260, %261 : vector<1x128xf32>
    %263 = vector.broadcast %262 : vector<1x128xf32> to vector<8x128xf32>
    %264 = arith.addf %258, %263 : vector<8x128xf32>
    %265 = vector.broadcast %207 : f32 to vector<8x128xf32>
    %266 = arith.mulf %265, %191 : vector<8x128xf32>
    %267 = vector.broadcast %208 : f32 to vector<8x128xf32>
    %268 = arith.mulf %267, %192 : vector<8x128xf32>
    %269 = arith.addf %266, %268 : vector<8x128xf32>
    %270 = vector.broadcast %209 : f32 to vector<8x128xf32>
    %271 = arith.mulf %270, %193 : vector<8x128xf32>
    %272 = arith.addf %269, %271 : vector<8x128xf32>
    %273 = vector.broadcast %210 : f32 to vector<8x128xf32>
    %274 = arith.mulf %273, %194 : vector<8x128xf32>
    %275 = arith.addf %272, %274 : vector<8x128xf32>
    %276 = arith.addf %207, %208 : f32
    %277 = arith.addf %276, %209 : f32
    %278 = arith.addf %277, %210 : f32
    %279 = vector.broadcast %196 : vector<1x128xf32> to vector<8x128xf32>
    %280 = arith.mulf %279, %275 : vector<8x128xf32>
    %281 = arith.addf %193, %280 : vector<8x128xf32>
    %282 = vector.broadcast %278 : f32 to vector<1x128xf32>
    %283 = arith.mulf %198, %282 : vector<1x128xf32>
    %284 = vector.broadcast %217 : f32 to vector<1x128xf32>
    %285 = arith.addf %283, %284 : vector<1x128xf32>
    %286 = vector.broadcast %285 : vector<1x128xf32> to vector<8x128xf32>
    %287 = arith.addf %281, %286 : vector<8x128xf32>
    %288 = vector.broadcast %211 : f32 to vector<8x128xf32>
    %289 = arith.mulf %288, %191 : vector<8x128xf32>
    %290 = vector.broadcast %212 : f32 to vector<8x128xf32>
    %291 = arith.mulf %290, %192 : vector<8x128xf32>
    %292 = arith.addf %289, %291 : vector<8x128xf32>
    %293 = vector.broadcast %213 : f32 to vector<8x128xf32>
    %294 = arith.mulf %293, %193 : vector<8x128xf32>
    %295 = arith.addf %292, %294 : vector<8x128xf32>
    %296 = vector.broadcast %214 : f32 to vector<8x128xf32>
    %297 = arith.mulf %296, %194 : vector<8x128xf32>
    %298 = arith.addf %295, %297 : vector<8x128xf32>
    %299 = arith.addf %211, %212 : f32
    %300 = arith.addf %299, %213 : f32
    %301 = arith.addf %300, %214 : f32
    %302 = vector.broadcast %196 : vector<1x128xf32> to vector<8x128xf32>
    %303 = arith.mulf %302, %298 : vector<8x128xf32>
    %304 = arith.addf %194, %303 : vector<8x128xf32>
    %305 = vector.broadcast %301 : f32 to vector<1x128xf32>
    %306 = arith.mulf %198, %305 : vector<1x128xf32>
    %307 = vector.broadcast %218 : f32 to vector<1x128xf32>
    %308 = arith.addf %306, %307 : vector<1x128xf32>
    %309 = vector.broadcast %308 : vector<1x128xf32> to vector<8x128xf32>
    %310 = arith.addf %304, %309 : vector<8x128xf32>
    %311 = tpu.concatenate %241, %264, %287, %310 in 0 : vector<8x128xf32>, vector<8x128xf32>, vector<8x128xf32>, vector<8x128xf32> -> vector<32x128xf32>
    %c1_114 = arith.constant 1 : index
    %c0_115 = arith.constant 0 : index
    %c0_116 = arith.constant 0 : index
    %312 = vector.load %arg8[%c1_114, %c0_115, %c0_116] : memref<3x1x128xf32, #tpu.memory_space<vmem>>, vector<1x1x128xf32>
    %313 = vector.shape_cast %312 : vector<1x1x128xf32> to vector<1x128xf32>
    %314 = vector.broadcast %313 : vector<1x128xf32> to vector<32x128xf32>
    %315 = arith.mulf %311, %314 : vector<32x128xf32>
    %c1_117 = arith.constant 1 : index
    %c0_118 = arith.constant 0 : index
    %c0_119 = arith.constant 0 : index
    %316 = vector.load %arg9[%c1_117, %c0_118, %c0_119] : memref<3x1x128xf32, #tpu.memory_space<vmem>>, vector<1x1x128xf32>
    %317 = vector.shape_cast %316 : vector<1x1x128xf32> to vector<1x128xf32>
    %318 = vector.broadcast %317 : vector<1x128xf32> to vector<32x128xf32>
    %319 = arith.addf %315, %318 : vector<32x128xf32>
    %320 = arith.truncf %319 : vector<32x128xf32> to vector<32x128xbf16>
    %c1_120 = arith.constant 1 : index
    %c0_121 = arith.constant 0 : index
    %c0_122 = arith.constant 0 : index
    %321 = vector.load %arg10[%c1_120, %c0_121, %c0_122] : memref<3x128x128xbf16, #tpu.memory_space<vmem>>, vector<1x128x128xbf16>
    %322 = vector.shape_cast %321 : vector<1x128x128xbf16> to vector<128x128xbf16>
    %cst_123 = arith.constant dense<0.000000e+00> : vector<32x128xf32>
    %323 = tpu.matmul %320, %322, %cst_123 {dimension_numbers = #tpu.dot_dimension_numbers<[1], [0], [0], [1], [0, 0, 1, 1], [], []>} : vector<32x128xbf16>, vector<128x128xbf16>, vector<32x128xf32> -> vector<32x128xf32>
    %c1_124 = arith.constant 1 : index
    %c0_125 = arith.constant 0 : index
    %c0_126 = arith.constant 0 : index
    %324 = vector.load %arg11[%c1_124, %c0_125, %c0_126] : memref<3x1x128xf32, #tpu.memory_space<vmem>>, vector<1x1x128xf32>
    %325 = vector.shape_cast %324 : vector<1x1x128xf32> to vector<1x128xf32>
    %326 = vector.broadcast %325 : vector<1x128xf32> to vector<32x128xf32>
    %327 = arith.addf %323, %326 : vector<32x128xf32>
    %328 = arith.mulf %327, %327 : vector<32x128xf32>
    %329 = arith.mulf %327, %328 : vector<32x128xf32>
    %cst_127 = arith.constant 4.471500e-02 : f32
    %330 = vector.broadcast %cst_127 : f32 to vector<32x128xf32>
    %331 = arith.mulf %330, %329 : vector<32x128xf32>
    %332 = arith.addf %327, %331 : vector<32x128xf32>
    %cst_128 = arith.constant 0.797884583 : f32
    %333 = vector.broadcast %cst_128 : f32 to vector<32x128xf32>
    %334 = arith.mulf %333, %332 : vector<32x128xf32>
    %335 = math.tanh %334 : vector<32x128xf32>
    %cst_129 = arith.constant 1.000000e+00 : f32
    %336 = vector.broadcast %cst_129 : f32 to vector<32x128xf32>
    %337 = arith.addf %336, %335 : vector<32x128xf32>
    %cst_130 = arith.constant 5.000000e-01 : f32
    %338 = vector.broadcast %cst_130 : f32 to vector<32x128xf32>
    %339 = arith.mulf %338, %337 : vector<32x128xf32>
    %340 = arith.mulf %327, %339 : vector<32x128xf32>
    %341 = arith.truncf %340 : vector<32x128xf32> to vector<32x128xbf16>
    %c1_131 = arith.constant 1 : index
    %c0_132 = arith.constant 0 : index
    %c0_133 = arith.constant 0 : index
    %342 = vector.load %arg12[%c1_131, %c0_132, %c0_133] : memref<3x128x128xbf16, #tpu.memory_space<vmem>>, vector<1x128x128xbf16>
    %343 = vector.shape_cast %342 : vector<1x128x128xbf16> to vector<128x128xbf16>
    %cst_134 = arith.constant dense<0.000000e+00> : vector<32x128xf32>
    %344 = tpu.matmul %341, %343, %cst_134 {dimension_numbers = #tpu.dot_dimension_numbers<[1], [0], [0], [1], [0, 0, 1, 1], [], []>} : vector<32x128xbf16>, vector<128x128xbf16>, vector<32x128xf32> -> vector<32x128xf32>
    %c1_135 = arith.constant 1 : index
    %c0_136 = arith.constant 0 : index
    %c0_137 = arith.constant 0 : index
    %345 = vector.load %arg13[%c1_135, %c0_136, %c0_137] : memref<3x1x128xf32, #tpu.memory_space<vmem>>, vector<1x1x128xf32>
    %346 = vector.shape_cast %345 : vector<1x1x128xf32> to vector<1x128xf32>
    %347 = vector.broadcast %346 : vector<1x128xf32> to vector<32x128xf32>
    %348 = arith.addf %344, %347 : vector<32x128xf32>
    %349 = arith.addf %241, %264 : vector<8x128xf32>
    %350 = arith.addf %349, %287 : vector<8x128xf32>
    %351 = arith.addf %350, %310 : vector<8x128xf32>
    %352 = vector.extract_strided_slice %348 {offsets = [0, 0], sizes = [8, 128], strides = [1, 1]} : vector<32x128xf32> to vector<8x128xf32>
    %353 = arith.addf %351, %352 : vector<8x128xf32>
    %354 = vector.extract_strided_slice %348 {offsets = [8, 0], sizes = [8, 128], strides = [1, 1]} : vector<32x128xf32> to vector<8x128xf32>
    %355 = arith.addf %353, %354 : vector<8x128xf32>
    %356 = vector.extract_strided_slice %348 {offsets = [16, 0], sizes = [8, 128], strides = [1, 1]} : vector<32x128xf32> to vector<8x128xf32>
    %357 = arith.addf %355, %356 : vector<8x128xf32>
    %358 = vector.extract_strided_slice %348 {offsets = [24, 0], sizes = [8, 128], strides = [1, 1]} : vector<32x128xf32> to vector<8x128xf32>
    %359 = arith.addf %357, %358 : vector<8x128xf32>
    %cst_138 = arith.constant 2.500000e-01 : f32
    %360 = vector.broadcast %cst_138 : f32 to vector<8x128xf32>
    %361 = arith.mulf %359, %360 : vector<8x128xf32>
    %c0_139 = arith.constant 0 : index
    %c2_140 = arith.constant 2 : index
    %362 = vector.load %arg4[%c0_139, %c2_140] : memref<8x3xi32, #tpu.memory_space<vmem>>, vector<8x1xi32>
    %363 = tpu.iota {dimensions = array<i32: 1>} : vector<8x128xi32>
    %364 = vector.broadcast %362 : vector<8x1xi32> to vector<8x128xi32>
    %365 = arith.cmpi eq, %363, %364 : vector<8x128xi32>
    %cst_141 = arith.constant 1.000000e+00 : f32
    %cst_142 = arith.constant 0.000000e+00 : f32
    %366 = vector.broadcast %cst_141 : f32 to vector<8x128xf32>
    %367 = vector.broadcast %cst_142 : f32 to vector<8x128xf32>
    %368 = arith.select %365, %366, %367 : vector<8x128xi1>, vector<8x128xf32>
    %369 = arith.truncf %368 : vector<8x128xf32> to vector<8x128xbf16>
    %c0_143 = arith.constant 0 : index
    %c0_144 = arith.constant 0 : index
    %370 = vector.load %arg5[%c0_143, %c0_144] : memref<128x256xbf16, #tpu.memory_space<vmem>>, vector<128x256xbf16>
    %cst_145 = arith.constant dense<0.000000e+00> : vector<8x256xf32>
    %371 = tpu.matmul %369, %370, %cst_145 {dimension_numbers = #tpu.dot_dimension_numbers<[1], [0], [0], [1], [0, 0, 1, 1], [], []>} : vector<8x128xbf16>, vector<128x256xbf16>, vector<8x256xf32> -> vector<8x256xf32>
    %372 = vector.extract_strided_slice %371 {offsets = [0, 0], sizes = [8, 128], strides = [1, 1]} : vector<8x256xf32> to vector<8x128xf32>
    %373 = vector.extract_strided_slice %371 {offsets = [0, 128], sizes = [8, 128], strides = [1, 1]} : vector<8x256xf32> to vector<8x128xf32>
    %374 = arith.mulf %373, %372 : vector<8x128xf32>
    %375 = arith.subf %373, %372 : vector<8x128xf32>
    %c2_146 = arith.constant 2 : index
    %c0_147 = arith.constant 0 : index
    %c0_148 = arith.constant 0 : index
    %376 = vector.load %arg6[%c2_146, %c0_147, %c0_148] : memref<3x1x128xf32, #tpu.memory_space<vmem>>, vector<1x1x128xf32>
    %377 = vector.shape_cast %376 : vector<1x1x128xf32> to vector<1x128xf32>
    %c2_149 = arith.constant 2 : index
    %c0_150 = arith.constant 0 : index
    %c0_151 = arith.constant 0 : index
    %378 = vector.load %arg7[%c2_149, %c0_150, %c0_151] : memref<3x1x128xf32, #tpu.memory_space<vmem>>, vector<1x1x128xf32>
    %379 = vector.shape_cast %378 : vector<1x1x128xf32> to vector<1x128xf32>
    %c2_152 = arith.constant 2 : index
    %c0_153 = arith.constant 0 : index
    %380 = memref.load %arg1[%c2_152, %c0_153] : memref<3x16xf32, #tpu.memory_space<smem>>
    %c2_154 = arith.constant 2 : index
    %c1_155 = arith.constant 1 : index
    %381 = memref.load %arg1[%c2_154, %c1_155] : memref<3x16xf32, #tpu.memory_space<smem>>
    %c2_156 = arith.constant 2 : index
    %c2_157 = arith.constant 2 : index
    %382 = memref.load %arg1[%c2_156, %c2_157] : memref<3x16xf32, #tpu.memory_space<smem>>
    %c2_158 = arith.constant 2 : index
    %c3_159 = arith.constant 3 : index
    %383 = memref.load %arg1[%c2_158, %c3_159] : memref<3x16xf32, #tpu.memory_space<smem>>
    %c2_160 = arith.constant 2 : index
    %c4_161 = arith.constant 4 : index
    %384 = memref.load %arg1[%c2_160, %c4_161] : memref<3x16xf32, #tpu.memory_space<smem>>
    %c2_162 = arith.constant 2 : index
    %c5_163 = arith.constant 5 : index
    %385 = memref.load %arg1[%c2_162, %c5_163] : memref<3x16xf32, #tpu.memory_space<smem>>
    %c2_164 = arith.constant 2 : index
    %c6_165 = arith.constant 6 : index
    %386 = memref.load %arg1[%c2_164, %c6_165] : memref<3x16xf32, #tpu.memory_space<smem>>
    %c2_166 = arith.constant 2 : index
    %c7_167 = arith.constant 7 : index
    %387 = memref.load %arg1[%c2_166, %c7_167] : memref<3x16xf32, #tpu.memory_space<smem>>
    %c2_168 = arith.constant 2 : index
    %c8_169 = arith.constant 8 : index
    %388 = memref.load %arg1[%c2_168, %c8_169] : memref<3x16xf32, #tpu.memory_space<smem>>
    %c2_170 = arith.constant 2 : index
    %c9_171 = arith.constant 9 : index
    %389 = memref.load %arg1[%c2_170, %c9_171] : memref<3x16xf32, #tpu.memory_space<smem>>
    %c2_172 = arith.constant 2 : index
    %c10_173 = arith.constant 10 : index
    %390 = memref.load %arg1[%c2_172, %c10_173] : memref<3x16xf32, #tpu.memory_space<smem>>
    %c2_174 = arith.constant 2 : index
    %c11_175 = arith.constant 11 : index
    %391 = memref.load %arg1[%c2_174, %c11_175] : memref<3x16xf32, #tpu.memory_space<smem>>
    %c2_176 = arith.constant 2 : index
    %c12_177 = arith.constant 12 : index
    %392 = memref.load %arg1[%c2_176, %c12_177] : memref<3x16xf32, #tpu.memory_space<smem>>
    %c2_178 = arith.constant 2 : index
    %c13_179 = arith.constant 13 : index
    %393 = memref.load %arg1[%c2_178, %c13_179] : memref<3x16xf32, #tpu.memory_space<smem>>
    %c2_180 = arith.constant 2 : index
    %c14_181 = arith.constant 14 : index
    %394 = memref.load %arg1[%c2_180, %c14_181] : memref<3x16xf32, #tpu.memory_space<smem>>
    %c2_182 = arith.constant 2 : index
    %c15_183 = arith.constant 15 : index
    %395 = memref.load %arg1[%c2_182, %c15_183] : memref<3x16xf32, #tpu.memory_space<smem>>
    %c2_184 = arith.constant 2 : index
    %c0_185 = arith.constant 0 : index
    %396 = memref.load %arg2[%c2_184, %c0_185] : memref<3x4xf32, #tpu.memory_space<smem>>
    %c2_186 = arith.constant 2 : index
    %c1_187 = arith.constant 1 : index
    %397 = memref.load %arg2[%c2_186, %c1_187] : memref<3x4xf32, #tpu.memory_space<smem>>
    %c2_188 = arith.constant 2 : index
    %c2_189 = arith.constant 2 : index
    %398 = memref.load %arg2[%c2_188, %c2_189] : memref<3x4xf32, #tpu.memory_space<smem>>
    %c2_190 = arith.constant 2 : index
    %c3_191 = arith.constant 3 : index
    %399 = memref.load %arg2[%c2_190, %c3_191] : memref<3x4xf32, #tpu.memory_space<smem>>
    %400 = vector.broadcast %380 : f32 to vector<8x128xf32>
    %401 = arith.mulf %400, %372 : vector<8x128xf32>
    %402 = vector.broadcast %381 : f32 to vector<8x128xf32>
    %403 = arith.mulf %402, %373 : vector<8x128xf32>
    %404 = arith.addf %401, %403 : vector<8x128xf32>
    %405 = vector.broadcast %382 : f32 to vector<8x128xf32>
    %406 = arith.mulf %405, %374 : vector<8x128xf32>
    %407 = arith.addf %404, %406 : vector<8x128xf32>
    %408 = vector.broadcast %383 : f32 to vector<8x128xf32>
    %409 = arith.mulf %408, %375 : vector<8x128xf32>
    %410 = arith.addf %407, %409 : vector<8x128xf32>
    %411 = arith.addf %380, %381 : f32
    %412 = arith.addf %411, %382 : f32
    %413 = arith.addf %412, %383 : f32
    %414 = vector.broadcast %377 : vector<1x128xf32> to vector<8x128xf32>
    %415 = arith.mulf %414, %410 : vector<8x128xf32>
    %416 = arith.addf %372, %415 : vector<8x128xf32>
    %417 = vector.broadcast %413 : f32 to vector<1x128xf32>
    %418 = arith.mulf %379, %417 : vector<1x128xf32>
    %419 = vector.broadcast %396 : f32 to vector<1x128xf32>
    %420 = arith.addf %418, %419 : vector<1x128xf32>
    %421 = vector.broadcast %420 : vector<1x128xf32> to vector<8x128xf32>
    %422 = arith.addf %416, %421 : vector<8x128xf32>
    %423 = vector.broadcast %384 : f32 to vector<8x128xf32>
    %424 = arith.mulf %423, %372 : vector<8x128xf32>
    %425 = vector.broadcast %385 : f32 to vector<8x128xf32>
    %426 = arith.mulf %425, %373 : vector<8x128xf32>
    %427 = arith.addf %424, %426 : vector<8x128xf32>
    %428 = vector.broadcast %386 : f32 to vector<8x128xf32>
    %429 = arith.mulf %428, %374 : vector<8x128xf32>
    %430 = arith.addf %427, %429 : vector<8x128xf32>
    %431 = vector.broadcast %387 : f32 to vector<8x128xf32>
    %432 = arith.mulf %431, %375 : vector<8x128xf32>
    %433 = arith.addf %430, %432 : vector<8x128xf32>
    %434 = arith.addf %384, %385 : f32
    %435 = arith.addf %434, %386 : f32
    %436 = arith.addf %435, %387 : f32
    %437 = vector.broadcast %377 : vector<1x128xf32> to vector<8x128xf32>
    %438 = arith.mulf %437, %433 : vector<8x128xf32>
    %439 = arith.addf %373, %438 : vector<8x128xf32>
    %440 = vector.broadcast %436 : f32 to vector<1x128xf32>
    %441 = arith.mulf %379, %440 : vector<1x128xf32>
    %442 = vector.broadcast %397 : f32 to vector<1x128xf32>
    %443 = arith.addf %441, %442 : vector<1x128xf32>
    %444 = vector.broadcast %443 : vector<1x128xf32> to vector<8x128xf32>
    %445 = arith.addf %439, %444 : vector<8x128xf32>
    %446 = vector.broadcast %388 : f32 to vector<8x128xf32>
    %447 = arith.mulf %446, %372 : vector<8x128xf32>
    %448 = vector.broadcast %389 : f32 to vector<8x128xf32>
    %449 = arith.mulf %448, %373 : vector<8x128xf32>
    %450 = arith.addf %447, %449 : vector<8x128xf32>
    %451 = vector.broadcast %390 : f32 to vector<8x128xf32>
    %452 = arith.mulf %451, %374 : vector<8x128xf32>
    %453 = arith.addf %450, %452 : vector<8x128xf32>
    %454 = vector.broadcast %391 : f32 to vector<8x128xf32>
    %455 = arith.mulf %454, %375 : vector<8x128xf32>
    %456 = arith.addf %453, %455 : vector<8x128xf32>
    %457 = arith.addf %388, %389 : f32
    %458 = arith.addf %457, %390 : f32
    %459 = arith.addf %458, %391 : f32
    %460 = vector.broadcast %377 : vector<1x128xf32> to vector<8x128xf32>
    %461 = arith.mulf %460, %456 : vector<8x128xf32>
    %462 = arith.addf %374, %461 : vector<8x128xf32>
    %463 = vector.broadcast %459 : f32 to vector<1x128xf32>
    %464 = arith.mulf %379, %463 : vector<1x128xf32>
    %465 = vector.broadcast %398 : f32 to vector<1x128xf32>
    %466 = arith.addf %464, %465 : vector<1x128xf32>
    %467 = vector.broadcast %466 : vector<1x128xf32> to vector<8x128xf32>
    %468 = arith.addf %462, %467 : vector<8x128xf32>
    %469 = vector.broadcast %392 : f32 to vector<8x128xf32>
    %470 = arith.mulf %469, %372 : vector<8x128xf32>
    %471 = vector.broadcast %393 : f32 to vector<8x128xf32>
    %472 = arith.mulf %471, %373 : vector<8x128xf32>
    %473 = arith.addf %470, %472 : vector<8x128xf32>
    %474 = vector.broadcast %394 : f32 to vector<8x128xf32>
    %475 = arith.mulf %474, %374 : vector<8x128xf32>
    %476 = arith.addf %473, %475 : vector<8x128xf32>
    %477 = vector.broadcast %395 : f32 to vector<8x128xf32>
    %478 = arith.mulf %477, %375 : vector<8x128xf32>
    %479 = arith.addf %476, %478 : vector<8x128xf32>
    %480 = arith.addf %392, %393 : f32
    %481 = arith.addf %480, %394 : f32
    %482 = arith.addf %481, %395 : f32
    %483 = vector.broadcast %377 : vector<1x128xf32> to vector<8x128xf32>
    %484 = arith.mulf %483, %479 : vector<8x128xf32>
    %485 = arith.addf %375, %484 : vector<8x128xf32>
    %486 = vector.broadcast %482 : f32 to vector<1x128xf32>
    %487 = arith.mulf %379, %486 : vector<1x128xf32>
    %488 = vector.broadcast %399 : f32 to vector<1x128xf32>
    %489 = arith.addf %487, %488 : vector<1x128xf32>
    %490 = vector.broadcast %489 : vector<1x128xf32> to vector<8x128xf32>
    %491 = arith.addf %485, %490 : vector<8x128xf32>
    %492 = tpu.concatenate %422, %445, %468, %491 in 0 : vector<8x128xf32>, vector<8x128xf32>, vector<8x128xf32>, vector<8x128xf32> -> vector<32x128xf32>
    %c2_192 = arith.constant 2 : index
    %c0_193 = arith.constant 0 : index
    %c0_194 = arith.constant 0 : index
    %493 = vector.load %arg8[%c2_192, %c0_193, %c0_194] : memref<3x1x128xf32, #tpu.memory_space<vmem>>, vector<1x1x128xf32>
    %494 = vector.shape_cast %493 : vector<1x1x128xf32> to vector<1x128xf32>
    %495 = vector.broadcast %494 : vector<1x128xf32> to vector<32x128xf32>
    %496 = arith.mulf %492, %495 : vector<32x128xf32>
    %c2_195 = arith.constant 2 : index
    %c0_196 = arith.constant 0 : index
    %c0_197 = arith.constant 0 : index
    %497 = vector.load %arg9[%c2_195, %c0_196, %c0_197] : memref<3x1x128xf32, #tpu.memory_space<vmem>>, vector<1x1x128xf32>
    %498 = vector.shape_cast %497 : vector<1x1x128xf32> to vector<1x128xf32>
    %499 = vector.broadcast %498 : vector<1x128xf32> to vector<32x128xf32>
    %500 = arith.addf %496, %499 : vector<32x128xf32>
    %501 = arith.truncf %500 : vector<32x128xf32> to vector<32x128xbf16>
    %c2_198 = arith.constant 2 : index
    %c0_199 = arith.constant 0 : index
    %c0_200 = arith.constant 0 : index
    %502 = vector.load %arg10[%c2_198, %c0_199, %c0_200] : memref<3x128x128xbf16, #tpu.memory_space<vmem>>, vector<1x128x128xbf16>
    %503 = vector.shape_cast %502 : vector<1x128x128xbf16> to vector<128x128xbf16>
    %cst_201 = arith.constant dense<0.000000e+00> : vector<32x128xf32>
    %504 = tpu.matmul %501, %503, %cst_201 {dimension_numbers = #tpu.dot_dimension_numbers<[1], [0], [0], [1], [0, 0, 1, 1], [], []>} : vector<32x128xbf16>, vector<128x128xbf16>, vector<32x128xf32> -> vector<32x128xf32>
    %c2_202 = arith.constant 2 : index
    %c0_203 = arith.constant 0 : index
    %c0_204 = arith.constant 0 : index
    %505 = vector.load %arg11[%c2_202, %c0_203, %c0_204] : memref<3x1x128xf32, #tpu.memory_space<vmem>>, vector<1x1x128xf32>
    %506 = vector.shape_cast %505 : vector<1x1x128xf32> to vector<1x128xf32>
    %507 = vector.broadcast %506 : vector<1x128xf32> to vector<32x128xf32>
    %508 = arith.addf %504, %507 : vector<32x128xf32>
    %509 = arith.mulf %508, %508 : vector<32x128xf32>
    %510 = arith.mulf %508, %509 : vector<32x128xf32>
    %cst_205 = arith.constant 4.471500e-02 : f32
    %511 = vector.broadcast %cst_205 : f32 to vector<32x128xf32>
    %512 = arith.mulf %511, %510 : vector<32x128xf32>
    %513 = arith.addf %508, %512 : vector<32x128xf32>
    %cst_206 = arith.constant 0.797884583 : f32
    %514 = vector.broadcast %cst_206 : f32 to vector<32x128xf32>
    %515 = arith.mulf %514, %513 : vector<32x128xf32>
    %516 = math.tanh %515 : vector<32x128xf32>
    %cst_207 = arith.constant 1.000000e+00 : f32
    %517 = vector.broadcast %cst_207 : f32 to vector<32x128xf32>
    %518 = arith.addf %517, %516 : vector<32x128xf32>
    %cst_208 = arith.constant 5.000000e-01 : f32
    %519 = vector.broadcast %cst_208 : f32 to vector<32x128xf32>
    %520 = arith.mulf %519, %518 : vector<32x128xf32>
    %521 = arith.mulf %508, %520 : vector<32x128xf32>
    %522 = arith.truncf %521 : vector<32x128xf32> to vector<32x128xbf16>
    %c2_209 = arith.constant 2 : index
    %c0_210 = arith.constant 0 : index
    %c0_211 = arith.constant 0 : index
    %523 = vector.load %arg12[%c2_209, %c0_210, %c0_211] : memref<3x128x128xbf16, #tpu.memory_space<vmem>>, vector<1x128x128xbf16>
    %524 = vector.shape_cast %523 : vector<1x128x128xbf16> to vector<128x128xbf16>
    %cst_212 = arith.constant dense<0.000000e+00> : vector<32x128xf32>
    %525 = tpu.matmul %522, %524, %cst_212 {dimension_numbers = #tpu.dot_dimension_numbers<[1], [0], [0], [1], [0, 0, 1, 1], [], []>} : vector<32x128xbf16>, vector<128x128xbf16>, vector<32x128xf32> -> vector<32x128xf32>
    %c2_213 = arith.constant 2 : index
    %c0_214 = arith.constant 0 : index
    %c0_215 = arith.constant 0 : index
    %526 = vector.load %arg13[%c2_213, %c0_214, %c0_215] : memref<3x1x128xf32, #tpu.memory_space<vmem>>, vector<1x1x128xf32>
    %527 = vector.shape_cast %526 : vector<1x1x128xf32> to vector<1x128xf32>
    %528 = vector.broadcast %527 : vector<1x128xf32> to vector<32x128xf32>
    %529 = arith.addf %525, %528 : vector<32x128xf32>
    %530 = arith.addf %422, %445 : vector<8x128xf32>
    %531 = arith.addf %530, %468 : vector<8x128xf32>
    %532 = arith.addf %531, %491 : vector<8x128xf32>
    %533 = vector.extract_strided_slice %529 {offsets = [0, 0], sizes = [8, 128], strides = [1, 1]} : vector<32x128xf32> to vector<8x128xf32>
    %534 = arith.addf %532, %533 : vector<8x128xf32>
    %535 = vector.extract_strided_slice %529 {offsets = [8, 0], sizes = [8, 128], strides = [1, 1]} : vector<32x128xf32> to vector<8x128xf32>
    %536 = arith.addf %534, %535 : vector<8x128xf32>
    %537 = vector.extract_strided_slice %529 {offsets = [16, 0], sizes = [8, 128], strides = [1, 1]} : vector<32x128xf32> to vector<8x128xf32>
    %538 = arith.addf %536, %537 : vector<8x128xf32>
    %539 = vector.extract_strided_slice %529 {offsets = [24, 0], sizes = [8, 128], strides = [1, 1]} : vector<32x128xf32> to vector<8x128xf32>
    %540 = arith.addf %538, %539 : vector<8x128xf32>
    %cst_216 = arith.constant 2.500000e-01 : f32
    %541 = vector.broadcast %cst_216 : f32 to vector<8x128xf32>
    %542 = arith.mulf %540, %541 : vector<8x128xf32>
    %543 = arith.mulf %180, %361 : vector<8x128xf32>
    %544 = arith.mulf %543, %542 : vector<8x128xf32>
    %c0_217 = arith.constant 0 : index
    %c0_218 = arith.constant 0 : index
    %545 = vector.load %arg14[%c0_217, %c0_218] : memref<1x128xf32, #tpu.memory_space<vmem>>, vector<1x128xf32>
    %546 = vector.broadcast %545 : vector<1x128xf32> to vector<8x128xf32>
    %547 = arith.mulf %544, %546 : vector<8x128xf32>
    %cst_219 = arith.constant dense<0.000000e+00> : vector<8xf32>
    %548 = vector.multi_reduction <add>, %547, %cst_219 [1] : vector<8x128xf32> to vector<8xf32>
    %549 = vector.shape_cast %548 : vector<8xf32> to vector<8x1xf32>
    %c0_220 = arith.constant 0 : index
    %550 = memref.load %arg3[%c0_220] : memref<1xf32, #tpu.memory_space<smem>>
    %551 = vector.broadcast %550 : f32 to vector<8x1xf32>
    %552 = arith.addf %549, %551 : vector<8x1xf32>
    %553 = arith.negf %552 : vector<8x1xf32>
    %554 = math.exp %553 : vector<8x1xf32>
    %cst_221 = arith.constant 1.000000e+00 : f32
    %555 = vector.broadcast %cst_221 : f32 to vector<8x1xf32>
    %556 = arith.addf %555, %554 : vector<8x1xf32>
    %557 = arith.divf %555, %556 : vector<8x1xf32>
    %c0_222 = arith.constant 0 : index
    %c0_223 = arith.constant 0 : index
    %558 = vector.load %arg15[%c0_222, %c0_223] : memref<8x1xf32, #tpu.memory_space<vmem>>, vector<8x1xf32>
    tpu.vector_store %arg15[%c0_222, %c0_223], %557 {strides = array<i32>} : memref<8x1xf32, #tpu.memory_space<vmem>>, vector<8x1xf32>,
    return
  }
  func.func @transform_0(%arg0: i32) -> (i32, i32) {
    %c0_i32 = arith.constant 0 : i32
    %c0_i32_0 = arith.constant 0 : i32
    %c0_i32_1 = arith.constant 0 : i32
    return %c0_i32, %c0_i32_0 : i32, i32
  }
  func.func @transform_1(%arg0: i32) -> (i32, i32) {
    %c0_i32 = arith.constant 0 : i32
    %c0_i32_0 = arith.constant 0 : i32
    %c0_i32_1 = arith.constant 0 : i32
    return %c0_i32, %c0_i32_0 : i32, i32
  }
  func.func @transform_2(%arg0: i32) -> i32 {
    %c0_i32 = arith.constant 0 : i32
    %c0_i32_0 = arith.constant 0 : i32
    return %c0_i32 : i32
  }
  func.func @transform_3(%arg0: i32) -> (i32, i32) {
    %c0_i32 = arith.constant 0 : i32
    %c0_i32_0 = arith.constant 0 : i32
    return %arg0, %c0_i32 : i32, i32
  }
  func.func @transform_4(%arg0: i32) -> (i32, i32) {
    %c0_i32 = arith.constant 0 : i32
    %c0_i32_0 = arith.constant 0 : i32
    %c0_i32_1 = arith.constant 0 : i32
    return %c0_i32, %c0_i32_0 : i32, i32
  }
  func.func @transform_5(%arg0: i32) -> (i32, i32, i32) {
    %c0_i32 = arith.constant 0 : i32
    %c0_i32_0 = arith.constant 0 : i32
    %c0_i32_1 = arith.constant 0 : i32
    %c0_i32_2 = arith.constant 0 : i32
    return %c0_i32, %c0_i32_0, %c0_i32_1 : i32, i32, i32
  }
  func.func @transform_6(%arg0: i32) -> (i32, i32, i32) {
    %c0_i32 = arith.constant 0 : i32
    %c0_i32_0 = arith.constant 0 : i32
    %c0_i32_1 = arith.constant 0 : i32
    %c0_i32_2 = arith.constant 0 : i32
    return %c0_i32, %c0_i32_0, %c0_i32_1 : i32, i32, i32
  }
  func.func @transform_7(%arg0: i32) -> (i32, i32, i32) {
    %c0_i32 = arith.constant 0 : i32
    %c0_i32_0 = arith.constant 0 : i32
    %c0_i32_1 = arith.constant 0 : i32
    %c0_i32_2 = arith.constant 0 : i32
    return %c0_i32, %c0_i32_0, %c0_i32_1 : i32, i32, i32
  }
  func.func @transform_8(%arg0: i32) -> (i32, i32, i32) {
    %c0_i32 = arith.constant 0 : i32
    %c0_i32_0 = arith.constant 0 : i32
    %c0_i32_1 = arith.constant 0 : i32
    %c0_i32_2 = arith.constant 0 : i32
    return %c0_i32, %c0_i32_0, %c0_i32_1 : i32, i32, i32
  }
  func.func @transform_9(%arg0: i32) -> (i32, i32, i32) {
    %c0_i32 = arith.constant 0 : i32
    %c0_i32_0 = arith.constant 0 : i32
    %c0_i32_1 = arith.constant 0 : i32
    %c0_i32_2 = arith.constant 0 : i32
    return %c0_i32, %c0_i32_0, %c0_i32_1 : i32, i32, i32
  }
  func.func @transform_10(%arg0: i32) -> (i32, i32, i32) {
    %c0_i32 = arith.constant 0 : i32
    %c0_i32_0 = arith.constant 0 : i32
    %c0_i32_1 = arith.constant 0 : i32
    %c0_i32_2 = arith.constant 0 : i32
    return %c0_i32, %c0_i32_0, %c0_i32_1 : i32, i32, i32
  }
  func.func @transform_11(%arg0: i32) -> (i32, i32, i32) {
    %c0_i32 = arith.constant 0 : i32
    %c0_i32_0 = arith.constant 0 : i32
    %c0_i32_1 = arith.constant 0 : i32
    %c0_i32_2 = arith.constant 0 : i32
    return %c0_i32, %c0_i32_0, %c0_i32_1 : i32, i32, i32
  }
  func.func @transform_12(%arg0: i32) -> (i32, i32, i32) {
    %c0_i32 = arith.constant 0 : i32
    %c0_i32_0 = arith.constant 0 : i32
    %c0_i32_1 = arith.constant 0 : i32
    %c0_i32_2 = arith.constant 0 : i32
    return %c0_i32, %c0_i32_0, %c0_i32_1 : i32, i32, i32
  }
  func.func @transform_13(%arg0: i32) -> (i32, i32) {
    %c0_i32 = arith.constant 0 : i32
    %c0_i32_0 = arith.constant 0 : i32
    %c0_i32_1 = arith.constant 0 : i32
    return %c0_i32, %c0_i32_0 : i32, i32
  }
  func.func @transform_14(%arg0: i32) -> (i32, i32) {
    %c0_i32 = arith.constant 0 : i32
    %c0_i32_0 = arith.constant 0 : i32
    return %arg0, %c0_i32 : i32, i32
  }
}

</mosaic_0001>

<bundles_post_ra>
// kernel: light_tc_forward.1
= control target key start
LH: loop header
LB: loop body
LE: loop exit
PB: predicated region body
PF: predicated region fallthrough
CT: control target
= control target key end

     0   :  { %s3225_s0 = inlined_call_operand.hbm [shape: f32[3,16], index: 0, kind: input, shape index: {}]   ;;  %s3226_s1 = inlined_call_operand.vmem [shape: f32[3,4], index: 1, kind: input, shape index: {}]   ;;  %s3227_s2 = inlined_call_operand.<no memory space> [shape: f32[1], index: 2, kind: input, shape index: {}]   ;;  %s3228_s3 = inlined_call_operand.vmem [shape: s32[8,3], index: 3, kind: input, shape index: {}]   ;;  %s3229_s4 = inlined_call_operand.vmem [shape: bf16[128,256], index: 4, kind: input, shape index: {}]   ;;  %s3230_s5 = inlined_call_operand.hbm [shape: f32[3,1,128], index: 5, kind: input, shape index: {}, may-alias: {5,7}]   ;;  %s3231_s6 = inlined_call_operand.vmem [shape: f32[3,1,128], index: 6, kind: input, shape index: {}, may-alias: {6,8,10,12}]   ;;  %s3232_s7 = inlined_call_operand.hbm [shape: f32[3,1,128], index: 7, kind: input, shape index: {}, may-alias: {5,7}]   ;;  %s3233_s8 = inlined_call_operand.vmem [shape: f32[3,1,128], index: 8, kind: input, shape index: {}, may-alias: {6,8,10,12}]   ;;  %s3234_s9 = inlined_call_operand.vmem [shape: bf16[3,128,128], index: 9, kind: input, shape index: {}]   ;;  %s3235_s10 = inlined_call_operand.vmem [shape: f32[3,1,128], index: 10, kind: input, shape index: {}, may-alias: {6,8,10,12}]   ;;  %s3236_s11 = inlined_call_operand.vmem [shape: bf16[3,128,128], index: 11, kind: input, shape index: {}]   ;;  %s3237_s12 = inlined_call_operand.vmem [shape: f32[3,1,128], index: 12, kind: input, shape index: {}, may-alias: {6,8,10,12}]   ;;  %s3238_s13 = inlined_call_operand.hbm [shape: f32[1,128], index: 13, kind: input, shape index: {}]   ;;  %s3239_s14 = inlined_call_operand.vmem [shape: f32[8,1], index: 14, kind: output, shape index: {}]  }
   0x1   :  { %3251 = sst [smem:[#allocation16_spill]] %s3227_s2 }
   0x2   :  { %3252 = sst [smem:[#allocation17_spill]] %s3229_s4 }
   0x3   :  { %3253 = sst [smem:[#allocation18_spill]] %s3234_s9 }
   0x4   :  { %3254 = sst [smem:[#allocation19_spill]] %s3235_s10 }
   0x5   :  { %3255 = sst [smem:[#allocation20_spill]] %s3237_s12 }
   0x6   :  { %3256 = sst [smem:[#allocation21_spill]] %s3239_s14 }
   0x7   :  { %20 = vsyncpa [#allocation5], 0 }
   0x8   :  { %21 = vsyncpa [#allocation6], 0 }
   0x9   :  { %22 = vsyncpa [#allocation4], 0 }
   0xa   :  { %23 = vsyncpa [#allocation10], 0  ;;  %s2363_s29 = smov [#allocation9]   ;;  %s38_s17 = sshll.u32 %s3226_s1, 4  ;;  %s2452_s17 = int_to_ptr.vmem [resolvable:$true] %s38_s17 }
   0xb   :  { %s67_s30 = sshll.u32 %s2363_s29, 4  ;;  %s2267_s20 = scalar_lea.hbm %s3232_s7, 48  ;;  %s68_s30 = int_to_ptr.vmem [resolvable:$true] %s67_s30 }
   0xc   :  { %p2268_p0 = scmp.ne.s32.totalorder %s3232_s7, %s2267_s20  ;;  %p2271_p1 = scmp.lt.u32.totalorder %s2267_s20, %s3232_s7 }
   0xe   :  { %p2273_p2 = pnand %p2271_p1, %p2268_p0 }
  0x10   :  { %2276 = shalt.err (!%p2273_p2)
}
  0x11   :  { %s2277_s25 = scalar_lea.vmem %s68_s30, 48  ;;  %s2281_s1 = scalar_lea.vmem %s68_s30, 64 }
  0x12   :  { %p2278_p3 = scmp.ne.s32.totalorder %s68_s30, %s2277_s25  ;;  %p2282_p4 = scmp.lt.s32.totalorder %s68_s30, %s68_s30 }
  0x13   :  { %p2283_p5 = scmp.lt.s32.totalorder %s2281_s1, %s2277_s25 }
  0x15   :  { %p2284_p6 = por %p2283_p5, %p2282_p4 }
  0x17   :  { %p2285_p7 = pnand %p2284_p6, %p2278_p3 }
  0x19   :  { %2288 = shalt.err (!%p2285_p7)
}
  0x1a   :  { %s2364_s26 = smov 16   ;;  %s2365_s27 = smov 1  }
  0x1b   :  { %73 = dma.hbm_to_vmem [thread:$0]  %s3232_s7, 48, %s68_s30, [#allocation10], %s2364_s26, %s2364_s26, %s2365_s27  }
  0x1c   :  { %s2289_s18 = scalar_lea.hbm %s3225_s0, 64 }
  0x1d   :  { %p2290_p8 = scmp.ne.s32.totalorder %s3225_s0, %s2289_s18  ;;  %p2293_p9 = scmp.lt.u32.totalorder %s2289_s18, %s3225_s0 }
  0x1f   :  { %p2295_p10 = pnand %p2293_p9, %p2290_p8 }
  0x21   :  { %2298 = shalt.err (!%p2295_p10)
}
  0x22   :  { %s2366_s23 = smov [#allocation3]   ;;  %s2299_s7 = scalar_lea.vmem %s2452_s17, 64 }
  0x23   :  { %31 = dma.hbm_to_smem %s3225_s0, 64, %s2366_s23, [#allocation5]  }
  0x24   :  { %p2300_p11 = scmp.ne.s32.totalorder %s2452_s17, %s2299_s7  ;;  %p2304_p12 = scmp.lt.s32.totalorder %s2452_s17, %s2452_s17 }
  0x25   :  { %p2305_p13 = scmp.lt.s32.totalorder %s2299_s7, %s2299_s7 }
  0x27   :  { %p2306_p0 = por %p2305_p13, %p2304_p12 }
  0x29   :  { %p2307_p1 = pnand %p2306_p0, %p2300_p11 }
  0x2b   :  { %2310 = shalt.err (!%p2307_p1)
}
  0x2c   :  { %s2367_s30 = smov [#allocation7]   ;;  %s2368_s1 = smov [#allocation8]  }
  0x2d   :  { %41 = dma.vmem_to_smem %s2452_s17, 64, %s2367_s30, [#allocation6]  }
  0x2e   :  { %s53_s28 = sshll.u32 %s2368_s1, 4  ;;  %s2369_s29 = smov [#allocation11]   ;;  %s54_s28 = int_to_ptr.vmem [resolvable:$true] %s53_s28 }
  0x2f   :  { %s90_s15 = sshll.u32 %s2369_s29, 4  ;;  %s2311_s0 = scalar_lea.hbm %s3230_s5, 48  ;;  %s91_s15 = int_to_ptr.vmem [resolvable:$true] %s90_s15 }
  0x30   :  { %p2312_p2 = scmp.ne.s32.totalorder %s3230_s5, %s2311_s0  ;;  %p2315_p3 = scmp.lt.u32.totalorder %s2311_s0, %s3230_s5 }
  0x32   :  { %p2317_p4 = pnand %p2315_p3, %p2312_p2 }
  0x34   :  { %2320 = shalt.err (!%p2317_p4)
}
  0x35   :  { %s2321_s17 = scalar_lea.vmem %s54_s28, 48  ;;  %s2325_s23 = scalar_lea.vmem %s54_s28, 64 }
  0x36   :  { %p2322_p5 = scmp.ne.s32.totalorder %s54_s28, %s2321_s17  ;;  %p2326_p6 = scmp.lt.s32.totalorder %s54_s28, %s54_s28 }
  0x37   :  { %p2327_p7 = scmp.lt.s32.totalorder %s2325_s23, %s2321_s17 }
  0x39   :  { %p2328_p8 = por %p2327_p7, %p2326_p6 }
  0x3b   :  { %p2329_p9 = pnand %p2328_p8, %p2322_p5 }
  0x3d   :  { %2332 = shalt.err (!%p2329_p9)
}
  0x3e   :  { %59 = dma.hbm_to_vmem [thread:$0]  %s3230_s5, 48, %s54_s28, [#allocation4], %s2364_s26, %s2364_s26, %s2365_s27  }
  0x3f   :  { %s2333_s1 = scalar_lea.hbm %s3238_s13, 16 }
  0x40   :  { %p2334_p10 = scmp.ne.s32.totalorder %s3238_s13, %s2333_s1  ;;  %p2337_p11 = scmp.lt.u32.totalorder %s2333_s1, %s3238_s13 }
  0x42   :  { %p2339_p12 = pnand %p2337_p11, %p2334_p10 }
  0x44   :  { %2342 = shalt.err (!%p2339_p12)
}
  0x45   :  { %s2343_s19 = scalar_lea.vmem %s91_s15, 16  ;;  %s2347_s20 = scalar_lea.vmem %s91_s15, 32 }
  0x46   :  { %p2344_p13 = scmp.ne.s32.totalorder %s91_s15, %s2343_s19  ;;  %p2348_p0 = scmp.lt.s32.totalorder %s91_s15, %s91_s15 }
  0x47   :  { %p2349_p1 = scmp.lt.s32.totalorder %s2347_s20, %s2343_s19 }
  0x49   :  { %p2350_p2 = por %p2349_p1, %p2348_p0 }
  0x4b   :  { %p2351_p3 = pnand %p2350_p2, %p2344_p13 }
  0x4d   :  { %2354 = shalt.err (!%p2351_p3)
}
  0x4e   :  { %93 = dma.hbm_to_vmem [thread:$0]  %s3238_s13, 16, %s91_s15, [#allocation10]  }
  0x4f   :  { %2355 = dma.done.wait [#allocation5], 64  }
  0x50   :  { %2356 = vsyncadd [#allocation5], 4294967232 }
  0x51   :  { %2357 = dma.done.wait [#allocation6], 64  }
  0x52   :  { %2358 = vsyncadd [#allocation6], 4294967232 }
  0x53   :  { %2359 = dma.done.wait [#allocation4], 48  }
  0x54   :  { %2360 = vsyncadd [#allocation4], 4294967248 }
  0x55   :  { %2361 = dma.done.wait [#allocation10], 64  }
  0x56   :  { %2362 = vsyncadd [#allocation10], 4294967232 }
  0x57   :  { %109 = sfence }
  0x58   :  { %v2516_v0 = vld [vmem:[%s3228_s3] sm:$0xff]  ;;  %v3248_v1 = vmov 0   ;;  %v2534_v4 = vld [vmem:[%s3229_s4 + $0x14] ss:$8 sps:$4 sm:$0xff]   ;;  %v2541_v5 = vld [vmem:[%s3229_s4 + $0x10] ss:$8 sps:$4 sm:$0xff]   ;;  %v112_v22 = vlaneseq }
  0x59   :  { %2150 = vset.pattern.permute.xlu0 %v3248_v1  ;;  %v2522_v2 = vld [vmem:[%s3229_s4 + $0x4] ss:$8 sps:$4 sm:$0xff]   ;;  %v2527_v3 = vld [vmem:[%s3229_s4] ss:$8 sps:$4 sm:$0xff]   ;;  %248 = vmatprep.mubr.bf16.mxu0 %v3248_v1  ;;  %v2371_v7 = vmov 1   ;;  %v2180_v14 = vld [vmem:[%s3234_s9 + $0x10] sm:$0xff]  }
  0x5a   :  { %115 = vperm.xlu0 %2150, %v2516_v0   ;;  %216 = vmatprep.subr.bf16.mxu0 %v2522_v2  ;;  %v2547_v6 = vld [vmem:[%s3229_s4 + $0x24] ss:$8 sps:$4 sm:$0xff]   ;;  %v2553_v8 = vld [vmem:[%s3229_s4 + $0x20] ss:$8 sps:$4 sm:$0xff]   ;;  %v2560_v9 = vld [vmem:[%s3229_s4 + $0x34] ss:$8 sps:$4 sm:$0xff]  }
  0x5b   :  { %217 = vmatpush1.bf16.msra.mxu0 %v2527_v3  ;;  %v2565_v10 = vld [vmem:[%s3229_s4 + $0x30] ss:$8 sps:$4 sm:$0xff]   ;;  %v2570_v11 = vld [vmem:[%s3229_s4 + $0x44] ss:$8 sps:$4 sm:$0xff]   ;;  %v2586_v15 = vld [vmem:[%s3229_s4 + $0x40] ss:$8 sps:$4 sm:$0xff]  }
  0x5c   :  { %218 = vmatprep.subr.bf16.mxu0 %v2534_v4  ;;  %v2178_v12 = vld [vmem:[%s3234_s9] sm:$0xff]   ;;  %v2179_v13 = vld [vmem:[%s3234_s9 + $0x8] sm:$0xff]   ;;  %v2591_v16 = vld [vmem:[%s3229_s4 + $0x54] ss:$8 sps:$4 sm:$0xff]   ;;  %v2627_v23 = vand.u32 127, %v112_v22  ;;  %v2373_v31 = vmov 2  }
  0x5d   :  { %2019 = vmatprep.subr.bf16.mxu1 %v2178_v12  ;;  %v2598_v17 = vld [vmem:[%s3229_s4 + $0x50] ss:$8 sps:$4 sm:$0xff]   ;;  %v2603_v18 = vld [vmem:[%s3229_s4 + $0x64] ss:$8 sps:$4 sm:$0xff]   ;;  %v2610_v19 = vld [vmem:[%s3229_s4 + $0x60] ss:$8 sps:$4 sm:$0xff]   ;;  %2152 = vset.pattern.permute.xlu1 %v2373_v31 }
  0x5e   :  { %2151 = vset.pattern.permute.xlu0 %v2371_v7  ;;  %2020 = vmatpush3.bf16.msra.mxu1 %v2178_v12  ;;  %v2615_v20 = vld [vmem:[%s3229_s4 + $0x74] ss:$8 sps:$4 sm:$0xff]   ;;  %v2622_v21 = vld [vmem:[%s3229_s4 + $0x70] ss:$8 sps:$4 sm:$0xff]   ;;  %v3246_v25 = vmov 1.0|1.0  }
  0x5f   :  { %219 = vmatpush1.bf16.msra.mxu0 %v2541_v5  ;;  %706 = vperm.xlu0 %2151, %v2516_v0   ;;  %v2181_v26 = vld [vmem:[%s3234_s9 + $0x18] sm:$0xff]   ;;  %v2182_v27 = vld [vmem:[%s3234_s9 + $0x20] sm:$0xff]   ;;  %v2183_v28 = vld [vmem:[%s3234_s9 + $0x28] sm:$0xff]   ;;  %s2648_s17 = sld [smem:[#allocation3]]  ;;  %s2650_s3 = sld [smem:[#allocation3 + $0x1]]  ;;  %v309_v32 = vshrl.u32 %v112_v22, 7 }
  0x60   :  { %220 = vmatprep.subr.bf16.mxu0 %v2547_v6  ;;  %2021 = vmatprep.subr.bf16.mxu1 %v2179_v13  ;;  %v2184_v29 = vld [vmem:[%s3234_s9 + $0x30] sm:$0xff]   ;;  %v2185_v30 = vld [vmem:[%s3234_s9 + $0x38] sm:$0xff]   ;;  %s2652_s23 = sld [smem:[#allocation3 + $0x4]]  ;;  %s2654_s24 = sld [smem:[#allocation3 + $0x5]]  ;;  %v260_v33 = vld [vmem:[%s3231_s6] sm:$0x1] }
  0x61   :  { %1209 = vperm.xlu1 %2152, %v2516_v0   ;;  %s2656_s25 = sld [smem:[#allocation3 + $0x2]]  ;;  %s2658_s7 = sld [smem:[#allocation3 + $0x8]]  ;;  %v2706_v35 = vsub.s32 0, %v309_v32  ;;  %vm1732_vm6 = vcmask 7168  }
  0x62   :  { %2022 = vmatpush3.bf16.msra.mxu1 %v2179_v13  ;;  %s2660_s30 = sld [smem:[#allocation3 + $0x9]]  ;;  %s2662_s1 = sld [smem:[#allocation3 + $0x6]] }
  0x63   :  { %221 = vmatpush1.bf16.msra.mxu0 %v2553_v8  ;;  %2023 = vmatprep.subr.bf16.mxu1 %v2180_v14  ;;  %s2666_s16 = sld [smem:[#allocation3 + $0xc]]  ;;  %s2668_s18 = sld [smem:[#allocation3 + $0xd]] }
  0x64   :  { %222 = vmatprep.subr.bf16.mxu0 %v2560_v9  ;;  %2153 = vset.pattern.permute.xlu0 %v2373_v31  ;;  %s2670_s0 = sld [smem:[#allocation3 + $0x3]]  ;;  %s2672_s19 = sld [smem:[#allocation3 + $0xa]] }
  0x65   :  { %s292_s29 = sadd.f32 %s2650_s3, %s2648_s17  ;;  %s2677_s26 = sld [smem:[#allocation3 + $0xe]]  ;;  %v281_v36 = vstv %s2648_s17  ;;  %v283_v40 = vstv %s2650_s3 }
  0x66   :  { %2024 = vmatpush3.bf16.msra.mxu1 %v2180_v14  ;;  %s325_s20 = sadd.f32 %s2654_s24, %s2652_s23  ;;  %s2679_s27 = sld [smem:[#allocation3 + $0x7]]  ;;  %v314_v37 = vstv %s2652_s23  ;;  %v316_v41 = vstv %s2654_s24 }
  0x67   :  { %223 = vmatpush1.bf16.msra.mxu0 %v2565_v10  ;;  %2025 = vmatprep.subr.bf16.mxu1 %v2181_v26  ;;  %s293_s5 = sadd.f32 %s2656_s25, %s292_s29  ;;  %s2685_s13 = sld [smem:[#allocation3 + $0xb]]  ;;  %v341_v38 = vstv %s2658_s7  ;;  %v286_v46 = vstv %s2656_s25 }
  0x68   :  { %224 = vmatprep.subr.bf16.mxu0 %v2570_v11  ;;  %s352_s28 = sadd.f32 %s2660_s30, %s2658_s7  ;;  %s2689_s14 = sld [smem:[#allocation7]]  ;;  %v343_v42 = vstv %s2660_s30  ;;  %v319_v50 = vstv %s2662_s1 }
  0x69   :  { %s326_s21 = sadd.f32 %s2662_s1, %s325_s20  ;;  %s2692_s2 = sld [smem:[#allocation3 + $0xf]]  ;;  %v368_v39 = vstv %s2666_s16  ;;  %v370_v43 = vstv %s2668_s18 }
  0x6a   :  { %2026 = vmatpush3.bf16.msra.mxu1 %v2181_v26  ;;  %s294_s22 = sadd.f32 %s2670_s0, %s293_s5  ;;  %s2694_s20 = sld [smem:[#allocation7 + $0x1]]  ;;  %v289_v47 = vstv %s2670_s0  ;;  %v346_v52 = vstv %s2672_s19 }
  0x6b   :  { %225 = vmatpush1.bf16.msra.mxu0 %v2586_v15  ;;  %2027 = vmatprep.subr.bf16.mxu1 %v2182_v27  ;;  %s379_s15 = sadd.f32 %s2668_s18, %s2666_s16  ;;  %s2697_s12 = sld [smem:[#allocation7 + $0x2]]  ;;  %v373_v56 = vstv %s2677_s26 }
  0x6c   :  { %226 = vmatprep.subr.bf16.mxu0 %v2591_v16  ;;  %s353_s29 = sadd.f32 %s2672_s19, %s352_s28  ;;  %v303_v34 = vstv %s294_s22  ;;  %s2716_s9 = sld [smem:[#allocation7 + $0x3]]  ;;  %v322_v51 = vstv %s2679_s27 }
  0x6d   :  { %s327_s5 = sadd.f32 %s2679_s27, %s326_s21  ;;  %v304_v44 = vmul.f32 %v303_v34, %v260_v33  ;;  %v349_v53 = vstv %s2685_s13  ;;  %s2829_s17 = sld [smem:[#allocation3 + $0x8d]] }
  0x6e   :  { %2028 = vmatpush3.bf16.msra.mxu1 %v2182_v27  ;;  %s2700_s4 = sadd.f32 %s2677_s26, %s379_s15  ;;  %v305_v48 = vstv %s2689_s14  ;;  %s2827_s14 = sld [smem:[#allocation3 + $0x8c]] }
  0x6f   :  { %227 = vmatpush1.bf16.msra.mxu0 %v2598_v17  ;;  %2029 = vmatprep.subr.bf16.mxu1 %v2183_v28  ;;  %s354_s28 = sadd.f32 %s2685_s13, %s353_s29  ;;  %v330_v45 = vstv %s327_s5  ;;  %v376_v57 = vstv %s2692_s2  ;;  %v306_v59 = vadd.f32 %v305_v48, %v304_v44  ;;  %s3259_s13 = sld [smem:[#allocation18_spill]] }
  0x70   :  { %228 = vmatprep.subr.bf16.mxu0 %v2603_v18  ;;  %s381_s10 = sadd.f32 %s2692_s2, %s2700_s4  ;;  %v331_v54 = vmul.f32 %v330_v45, %v260_v33  ;;  %v332_v55 = vstv %s2694_s20  ;;  %s3260_s20 = sld [smem:[#allocation19_spill]] }
  0x71   :  { %v357_v49 = vstv %s354_s28  ;;  %v359_v61 = vstv %s2697_s12  ;;  %s2800_s5 = sld [smem:[#allocation3 + $0x80]]  ;;  %s2802_s28 = sld [smem:[#allocation3 + $0x81]] }
  0x72   :  { %2030 = vmatpush3.bf16.msra.mxu1 %v2183_v28  ;;  %v358_v60 = vmul.f32 %v357_v49, %v260_v33  ;;  %v384_v62 = vstv %s381_s10  ;;  %v386_v45 = vstv %s2716_s9  ;;  %s2814_s9 = sld [smem:[#allocation3 + $0x84]]  ;;  %s2816_s10 = sld [smem:[#allocation3 + $0x85]] }
  0x73   :  { %229 = vmatpush1.bf16.msra.mxu0 %v2610_v19  ;;  %2031 = vmatprep.subr.bf16.mxu1 %v2184_v29  ;;  %v385_v31 = vmul.f32 %v384_v62, %v260_v33  ;;  %s2819_s2 = sld [smem:[#allocation3 + $0x82]]  ;;  %s2822_s4 = sld [smem:[#allocation3 + $0x88]] }
  0x74   :  { %230 = vmatprep.subr.bf16.mxu0 %v2615_v20  ;;  %v360_v48 = vadd.f32 %v359_v61, %v358_v60  ;;  %s2824_s12 = sld [smem:[#allocation3 + $0x89]]  ;;  %s2832_s3 = sld [smem:[#allocation3 + $0x86]] }
  0x75   :  { %s2835_s23 = sld [smem:[#allocation3 + $0x83]]  ;;  %s2840_s25 = sld [smem:[#allocation3 + $0x8a]] }
  0x76   :  { %2032 = vmatpush3.bf16.msra.mxu1 %v2184_v29  ;;  %s2842_s7 = sld [smem:[#allocation3 + $0x8e]]  ;;  %s2846_s1 = sld [smem:[#allocation3 + $0x87]] }
  0x77   :  { %231 = vmatpush1.bf16.msra.mxu0 %v2622_v21  ;;  %2033 = vmatprep.subr.bf16.mxu1 %v2185_v30  ;;  %s789_s24 = sadd.f32 %s2802_s28, %s2800_s5  ;;  %s2849_s18 = sld [smem:[#allocation3 + $0x8b]] }
  0x78   :  { %s822_s30 = sadd.f32 %s2816_s10, %s2814_s9  ;;  %s2853_s19 = sld [smem:[#allocation3 + $0x8f]] }
  0x79   :  { %s790_s16 = sadd.f32 %s2819_s2, %s789_s24  ;;  %s2861_s22 = sld [smem:[#allocation7 + $0x80]] }
  0x7a   :  { %2034 = vmatpush3.bf16.msra.mxu1 %v2185_v30  ;;  %v333_v30 = vadd.f32 %v332_v55, %v331_v54  ;;  %s849_s0 = sadd.f32 %s2824_s12, %s2822_s4  ;;  %s2866_s29 = sld [smem:[#allocation7 + $0x81]] }
  0x7b   :  { %711 = vmatprep.subr.bf16.mxu1 %v2522_v2  ;;  %s876_s26 = sadd.f32 %s2829_s17, %s2827_s14 }
  0x7c   :  { %s2858_s27 = sadd.f32 %s2832_s3, %s822_s30 }
  0x7d   :  { %s791_s21 = sadd.f32 %s2835_s23, %s790_s16  ;;  %s2879_s16 = sld [smem:[#allocation7 + $0x82]] }
  0x7e   :  { %s2864_s15 = sadd.f32 %s2840_s25, %s849_s0  ;;  %s3065_s0 = sld [smem:[#allocation3 + $0x10c]] }
  0x7f   :  { %s2869_s24 = sadd.f32 %s2842_s7, %s876_s26  ;;  %s3099_s26 = sld [smem:[#allocation7 + $0x100]] }
  0x80   :  { %s824_s30 = sadd.f32 %s2846_s1, %s2858_s27 }
  0xd9   :  { %v116_v24 = vpop.permute.xlu0 %115 }
  0xda   :  { %vm117_vm0 = vcmp.eq.s32.totalorder %v2627_v23, %v116_v24 }
  0xdb   :  { %vm1758_vm1 = vmpackc.low %vm117_vm0, %vm117_vm0 }
  0xdc   :  { %1759 = vmatmul.mubr.msk.bf16.vlgmr.msra.gmra.mrb[0].mxu0 %vm1758_vm1, %v3246_v25 }
 0x1af   :  { %v250_v58 = vpop.f32.mrb[0].mxu0 }
 0x1b0   :  { %v282_v63 = vmul.f32 %v281_v36, %v250_v58  ;;  %v315_v0 = vmul.f32 %v314_v37, %v250_v58  ;;  %v342_v2 = vmul.f32 %v341_v38, %v250_v58  ;;  %v369_v7 = vmul.f32 %v368_v39, %v250_v58  ;;  %v252_v12 = vpop.f32.mrb[1].mxu0 }
 0x1b1   :  { %v257_v13 = vmul.f32 %v252_v12, %v250_v58  ;;  %v258_v14 = vsub.f32 %v252_v12, %v250_v58  ;;  %v284_v22 = vmul.f32 %v283_v40, %v252_v12  ;;  %v317_v24 = vmul.f32 %v316_v41, %v252_v12  ;;  %v254_v26 = vpop.f32.mrb[2].mxu0  ;;  %v1778_v40 = vld [vmem:[#allocation8] ss:$0 sm:$0xff] }
 0x1b2   :  { %v344_v27 = vmul.f32 %v343_v42, %v252_v12  ;;  %v371_v28 = vmul.f32 %v370_v43, %v252_v12  ;;  %v255_v29 = vpop.f32.mrb[3].mxu0  ;;  %v387_v43 = vadd.f32 %v386_v45, %v385_v31 }
 0x1b3   :  { %v285_v32 = vadd.f32 %v284_v22, %v282_v63  ;;  %v287_v34 = vmul.f32 %v286_v46, %v257_v13  ;;  %v318_v44 = vadd.f32 %v317_v24, %v315_v0  ;;  %v320_v38 = vmul.f32 %v319_v50, %v257_v13 }
 0x1b4   :  { %v345_v36 = vadd.f32 %v344_v27, %v342_v2  ;;  %v372_v37 = vadd.f32 %v371_v28, %v369_v7  ;;  %v290_v49 = vmul.f32 %v289_v47, %v258_v14  ;;  %v347_v25 = vmul.f32 %v346_v52, %v257_v13 }
 0x1b5   :  { %v288_v39 = vadd.f32 %v287_v34, %v285_v32  ;;  %v374_v1 = vmul.f32 %v373_v56, %v257_v13  ;;  %v321_v41 = vadd.f32 %v320_v38, %v318_v44  ;;  %v323_v26 = vmul.f32 %v322_v51, %v258_v14 }
 0x1b6   :  { %v350_v42 = vmul.f32 %v349_v53, %v258_v14  ;;  %v348_v54 = vadd.f32 %v347_v25, %v345_v36  ;;  %v377_v55 = vmul.f32 %v376_v57, %v258_v14  ;;  %v311_v63 = vrot.slane %v306_v59, %v2706_v35  ;;  %v1779_v25 = vld [vmem:[#allocation9] ss:$0 sm:$0xff]  ;;  %v1780_v59 = vld [vmem:[%s3233_s8] ss:$0 sm:$0xff] }
 0x1b7   :  { %v291_v29 = vadd.f32 %v290_v49, %v288_v39  ;;  %v375_v33 = vadd.f32 %v374_v1, %v372_v37  ;;  %v324_v46 = vadd.f32 %v323_v26, %v321_v41  ;;  %v338_v47 = vrot.slane %v333_v30, %v2706_v35 }
 0x1b8   :  { %v351_v0 = vadd.f32 %v350_v42, %v348_v54  ;;  %v365_v52 = vrot.slane %v360_v48, %v2706_v35  ;;  %v392_v53 = vrot.slane %v387_v43, %v2706_v35  ;;  %v3257_v38 = vmov 0  }
 0x1b9   :  { %v301_v62 = vmul.f32 %v1778_v40, %v291_v29  ;;  %v378_v50 = vadd.f32 %v377_v55, %v375_v33  ;;  %v328_v60 = vmul.f32 %v1778_v40, %v324_v46 }
 0x1ba   :  { %v355_v61 = vmul.f32 %v1778_v40, %v351_v0 }
 0x1bb   :  { %v302_v56 = vadd.f32 %v301_v62, %v250_v58  ;;  %v382_v51 = vmul.f32 %v1778_v40, %v378_v50  ;;  %v329_v2 = vadd.f32 %v328_v60, %v252_v12 }
 0x1bc   :  { %v356_v57 = vadd.f32 %v355_v61, %v257_v13 }
 0x1bd   :  { %v313_v1 = vadd.f32 %v311_v63, %v302_v56  ;;  %v383_v7 = vadd.f32 %v382_v51, %v258_v14  ;;  %v340_v22 = vadd.f32 %v338_v47, %v329_v2 }
 0x1be   :  { %v367_v27 = vadd.f32 %v365_v52, %v356_v57 }
 0x1bf   :  { %v402_v24 = vmul.f32 %v1779_v25, %v313_v1  ;;  %v394_v28 = vadd.f32 %v392_v53, %v383_v7  ;;  %v403_v30 = vmul.f32 %v1779_v25, %v340_v22  ;;  %v697_v31 = vadd.f32 %v340_v22, %v313_v1 }
 0x1c0   :  { %v404_v32 = vmul.f32 %v1779_v25, %v367_v27  ;;  %v778_v7 = vstv %s2800_s5  ;;  %v811_v22 = vstv %s2814_s9  ;;  %s851_s9 = sadd.f32 %s2849_s18, %s2864_s15  ;;  %s3052_s15 = sld [smem:[#allocation3 + $0x104]] }
 0x1c1   :  { %v413_v58 = vadd.f32 %v1780_v59, %v402_v24  ;;  %v405_v34 = vmul.f32 %v1779_v25, %v394_v28  ;;  %v414_v44 = vadd.f32 %v1780_v59, %v403_v30  ;;  %v698_v45 = vadd.f32 %v697_v31, %v367_v27  ;;  %s3067_s5 = sld [smem:[#allocation3 + $0x10d]] }
 0x1c2   :  { %v415_v12 = vadd.f32 %v1780_v59, %v404_v32  ;;  %v838_v24 = vstv %s2822_s4  ;;  %v780_v27 = vstv %s2802_s28  ;;  %v840_v30 = vstv %s2824_s12  ;;  %v1801_v32 = vld [vmem:[%s3231_s6 + $0x1] sm:$0x1]  ;;  %s2886_s28 = sld [smem:[#allocation7 + $0x83]]  ;;  %s3078_s4 = sld [smem:[#allocation3 + $0x10a]] }
 0x1c3   :  { %v416_v36 = vadd.f32 %v1780_v59, %v405_v34  ;;  %v417_v37 = vpack.c.bf16 %v414_v44, %v413_v58  ;;  %v2739_v13 = vadd.f32 %v698_v45, %v394_v28  ;;  %v813_v28 = vstv %s2816_s10  ;;  %s878_s10 = sadd.f32 %s2853_s19, %s2869_s24  ;;  %s3261_s24 = sld [smem:[#allocation17_spill]] }
 0x1c4   :  { %v783_v34 = vstv %s2819_s2  ;;  %v800_v44 = vstv %s791_s21  ;;  %v816_v45 = vstv %s2832_s3  ;;  %s3038_s21 = sld [smem:[#allocation3 + $0x100]]  ;;  %s3080_s12 = sld [smem:[#allocation3 + $0x10e]] }
 0x1c5   :  { %v418_v14 = vpack.c.bf16 %v416_v36, %v415_v12  ;;  %2035 = vmatprep.mubr.bf16.mxu1 %v417_v37  ;;  %v865_v36 = vstv %s2827_s14  ;;  %v843_v37 = vstv %s2840_s25  ;;  %s3087_s3 = sld [smem:[#allocation3 + $0x10b]]  ;;  %s3091_s25 = sld [smem:[#allocation3 + $0x10f]] }
 0x1c7   :  { %2036 = vmatmul.mubr.bf16.vlgmr.msra.gmra.mrb[0].mxu1 %v418_v14  ;;  %v867_v14 = vstv %s2829_s17  ;;  %s3084_s17 = sld [smem:[#allocation3 + $0x107]] }
 0x1c8   :  { %712 = vmatpush1.bf16.msra.mxu1 %v2527_v3  ;;  %743 = vmatprep.mubr.bf16.mxu1 %v3257_v38  ;;  %v707_v3 = vpop.permute.xlu0 %706 }
 0x1c9   :  { %713 = vmatprep.subr.bf16.mxu1 %v2534_v4  ;;  %vm708_vm2 = vcmp.eq.s32.totalorder %v2627_v23, %v707_v3  ;;  %v3258_v4 = vmov 1.0|1.0  }
 0x1ca   :  { %vm1799_vm3 = vmpackc.low %vm708_vm2, %vm708_vm2 }
 0x1cc   :  { %714 = vmatpush1.bf16.msra.mxu1 %v2541_v5  ;;  %v2186_v5 = vld [vmem:[%s3236_s11] sm:$0xff]  }
 0x1cd   :  { %715 = vmatprep.subr.bf16.mxu1 %v2547_v6  ;;  %2039 = vmatprep.subr.bf16.mxu0 %v2186_v5  ;;  %v2187_v6 = vld [vmem:[%s3236_s11 + $0x8] sm:$0xff]  }
 0x1ce   :  { %2040 = vmatpush3.bf16.msra.mxu0 %v2186_v5 }
 0x1cf   :  { %2041 = vmatprep.subr.bf16.mxu0 %v2187_v6 }
 0x1d0   :  { %716 = vmatpush1.bf16.msra.mxu1 %v2553_v8  ;;  %v2188_v8 = vld [vmem:[%s3236_s11 + $0x10] sm:$0xff]  }
 0x1d1   :  { %717 = vmatprep.subr.bf16.mxu1 %v2560_v9  ;;  %v2189_v9 = vld [vmem:[%s3236_s11 + $0x18] sm:$0xff]  }
 0x1d2   :  { %2042 = vmatpush3.bf16.msra.mxu0 %v2187_v6 }
 0x1d3   :  { %2043 = vmatprep.subr.bf16.mxu0 %v2188_v8 }
 0x1d4   :  { %718 = vmatpush1.bf16.msra.mxu1 %v2565_v10  ;;  %v2190_v10 = vld [vmem:[%s3236_s11 + $0x20] sm:$0xff]  }
 0x1d5   :  { %719 = vmatprep.subr.bf16.mxu1 %v2570_v11  ;;  %v2191_v11 = vld [vmem:[%s3236_s11 + $0x28] sm:$0xff]  }
 0x1d6   :  { %2044 = vmatpush3.bf16.msra.mxu0 %v2188_v8 }
 0x1d7   :  { %2045 = vmatprep.subr.bf16.mxu0 %v2189_v9 }
 0x1d8   :  { %720 = vmatpush1.bf16.msra.mxu1 %v2586_v15  ;;  %v2192_v15 = vld [vmem:[%s3236_s11 + $0x30] sm:$0xff]  }
 0x1d9   :  { %721 = vmatprep.subr.bf16.mxu1 %v2591_v16  ;;  %v2193_v16 = vld [vmem:[%s3236_s11 + $0x38] sm:$0xff]  }
 0x1da   :  { %2046 = vmatpush3.bf16.msra.mxu0 %v2189_v9  ;;  %v870_v9 = vstv %s2842_s7  ;;  %s1379_s7 = sadd.f32 %s3067_s5, %s3065_s0 }
 0x1db   :  { %2047 = vmatprep.subr.bf16.mxu0 %v2190_v10 }
 0x1dc   :  { %722 = vmatpush1.bf16.msra.mxu1 %v2598_v17  ;;  %v2786_v17 = vld [vmem:[%s3259_s13 + $0x40] sm:$0xff]  }
 0x1dd   :  { %723 = vmatprep.subr.bf16.mxu1 %v2603_v18  ;;  %v1781_v18 = vld [vmem:[%s3260_s20] ss:$0 sm:$0xff] }
 0x1de   :  { %2048 = vmatpush3.bf16.msra.mxu0 %v2190_v10  ;;  %v786_v10 = vstv %s2835_s23 }
 0x1df   :  { %2049 = vmatprep.subr.bf16.mxu0 %v2191_v11 }
 0x1e0   :  { %724 = vmatpush1.bf16.msra.mxu1 %v2610_v19 }
 0x1e1   :  { %725 = vmatprep.subr.bf16.mxu1 %v2615_v20 }
 0x1e2   :  { %2050 = vmatpush3.bf16.msra.mxu0 %v2191_v11 }
 0x1e3   :  { %2051 = vmatprep.subr.bf16.mxu0 %v2192_v15 }
 0x1e4   :  { %726 = vmatpush1.bf16.msra.mxu1 %v2622_v21 }
 0x1e6   :  { %2052 = vmatpush3.bf16.msra.mxu0 %v2192_v15  ;;  %v801_v15 = vmul.f32 %v1801_v32, %v800_v44 }
 0x1e7   :  { %1800 = vmatmul.mubr.msk.bf16.vlgmr.msra.gmra.mrb[4].mxu1 %vm1799_vm3, %v3258_v4  ;;  %2053 = vmatprep.subr.bf16.mxu0 %v2193_v16 }
 0x1ea   :  { %2054 = vmatpush3.bf16.msra.mxu0 %v2193_v16  ;;  %v819_v16 = vstv %s2846_s1 }
 0x1eb   :  { %2059 = vmatprep.subr.bf16.mxu0 %v2786_v17 }
 0x29a   :  { %v2037_v48 = vpop.f32.mrb[0].mxu1 }
 0x29b   :  { %v2792_v39 = vadd.f32 %v2037_v48, %v1781_v18  ;;  %v524_v49 = vpop.f32.mrb[1].mxu1 }
 0x29c   :  { %v2794_v40 = vadd.f32 %v1781_v18, %v524_v49  ;;  %v2038_v41 = vpop.f32.mrb[2].mxu1 }
 0x29d   :  { %v541_v26 = vmul.f32 %v2792_v39, %v2792_v39  ;;  %v2798_v42 = vadd.f32 %v2038_v41, %v1781_v18  ;;  %v527_v43 = vpop.f32.mrb[3].mxu1  ;;  %v802_v41 = vstv %s2861_s22  ;;  %s3040_s22 = sld [smem:[#allocation3 + $0x101]] }
 0x29e   :  { %v539_v29 = vmul.f32 %v2794_v40, %v2794_v40  ;;  %v2806_v54 = vadd.f32 %v1781_v18, %v527_v43  ;;  %v827_v18 = vstv %s824_s30  ;;  %s3057_s30 = sld [smem:[#allocation3 + $0x102]] }
 0x29f   :  { %v545_v33 = vmul.f32 %v541_v26, %v2792_v39  ;;  %v542_v55 = vmul.f32 %v2798_v42, %v2798_v42  ;;  %v854_v26 = vstv %s851_s9  ;;  %s3073_s9 = sld [smem:[#allocation3 + $0x103]] }
 0x2a0   :  { %v543_v46 = vmul.f32 %v539_v29, %v2794_v40  ;;  %v540_v62 = vmul.f32 %v2806_v54, %v2806_v54  ;;  %v829_v29 = vstv %s2866_s29  ;;  %s3054_s29 = sld [smem:[#allocation3 + $0x105]] }
 0x2a1   :  { %v549_v63 = vmul.f32 0.044715, %v545_v33  ;;  %v546_v0 = vmul.f32 %v542_v55, %v2798_v42  ;;  %v846_v33 = vstv %s2849_s18  ;;  %v881_v55 = vstv %s878_s10 }
 0x2a2   :  { %v547_v50 = vmul.f32 0.044715, %v543_v46  ;;  %v544_v60 = vmul.f32 %v540_v62, %v2806_v54 }
 0x2a3   :  { %v553_v47 = vadd.f32 %v549_v63, %v2792_v39  ;;  %v550_v52 = vmul.f32 0.044715, %v546_v0  ;;  %v828_v63 = vmul.f32 %v1801_v32, %v827_v18  ;;  %v873_v0 = vstv %s2853_s19  ;;  %s3262_s19 = sld [smem:[#allocation20_spill]]  ;;  %s1292_s10 = sadd.f32 %s3040_s22, %s3038_s21 }
 0x2a4   :  { %v551_v56 = vadd.f32 %v547_v50, %v2794_v40  ;;  %v548_v61 = vmul.f32 0.044715, %v544_v60  ;;  %v2905_v60 = vadd.f32 %v802_v41, %v801_v15  ;;  %v2196_v41 = vld [vmem:[%s3259_s13 + $0x50] sm:$0xff]  }
 0x2a5   :  { %v557_v51 = vmul.f32 0.7978846, %v553_v47  ;;  %v554_v53 = vadd.f32 %v550_v52, %v2798_v42  ;;  %v855_v47 = vmul.f32 %v1801_v32, %v854_v26  ;;  %v856_v52 = vstv %s2879_s16  ;;  %v1822_v26 = vld [vmem:[#allocation8 + $0x1] ss:$0 sm:$0xff]  ;;  %s3062_s16 = sld [smem:[#allocation3 + $0x109]]  ;;  %s1293_s2 = sadd.f32 %s3057_s30, %s1292_s10 }
 0x2a6   :  { %v555_v2 = vmul.f32 0.7978846, %v551_v56  ;;  %v552_v25 = vadd.f32 %v548_v61, %v2806_v54  ;;  %s1325_s14 = sadd.f32 %s3054_s29, %s3052_s15 }
 0x2a7   :  { %2226 = vtanh.f32 %v557_v51  ;;  %v558_v1 = vmul.f32 0.7978846, %v554_v53  ;;  %v882_v53 = vmul.f32 %v1801_v32, %v881_v55  ;;  %s1294_s18 = sadd.f32 %s3073_s9, %s1293_s2  ;;  %s3117_s2 = sld [smem:[#allocation7 + $0x102]] }
 0x2a8   :  { %2228 = vtanh.f32 %v555_v2  ;;  %v556_v57 = vmul.f32 0.7978846, %v552_v25  ;;  %v883_v2 = vstv %s2886_s28  ;;  %s3070_s28 = sld [smem:[#allocation3 + $0x106]]  ;;  %s3105_s10 = sadd.f32 %s3080_s12, %s1379_s7 }
 0x2a9   :  { %2230 = vtanh.f32 %v558_v1 }
 0x2aa   :  { %2232 = vtanh.f32 %v556_v57 }
 0x2ae   :  { %s3096_s1 = sadd.f32 %s3070_s28, %s1325_s14 }
 0x2b0   :  { %s1327_s14 = sadd.f32 %s3084_s17, %s3096_s1 }
 0x2b1   :  { %v2227_v59 = vpop.eup %2226 }
 0x2b2   :  { %v2229_v31 = vpop.eup %2228  ;;  %v565_v58 = vadd.f32 1.0, %v2227_v59 }
 0x2b3   :  { %v2231_v12 = vpop.eup %2230  ;;  %v563_v3 = vadd.f32 1.0, %v2229_v31 }
 0x2b4   :  { %v2233_v5 = vpop.eup %2232  ;;  %v569_v6 = vmul.f32 0.5, %v565_v58  ;;  %v566_v8 = vadd.f32 1.0, %v2231_v12 }
 0x2b5   :  { %v564_v11 = vadd.f32 1.0, %v2233_v5  ;;  %v567_v49 = vmul.f32 0.5, %v563_v3 }
 0x2b6   :  { %v570_v48 = vmul.f32 0.5, %v566_v8  ;;  %v573_v46 = vmul.f32 %v569_v6, %v2792_v39 }
 0x2b7   :  { %v568_v43 = vmul.f32 0.5, %v564_v11  ;;  %v571_v61 = vmul.f32 %v567_v49, %v2794_v40  ;;  %v857_v40 = vadd.f32 %v856_v52, %v855_v47 }
 0x2b8   :  { %v574_v62 = vmul.f32 %v570_v48, %v2798_v42 }
 0x2b9   :  { %v572_v50 = vmul.f32 %v568_v43, %v2806_v54 }
 0x2ba   :  { %v745_v56 = vpop.f32.mrb[4].mxu1  ;;  %v576_v51 = vpack.c.bf16 %v574_v62, %v573_v46  ;;  %v862_v46 = vrot.slane %v857_v40, %v2706_v35 }
 0x2bb   :  { %v779_v25 = vmul.f32 %v778_v7, %v745_v56  ;;  %v812_v1 = vmul.f32 %v811_v22, %v745_v56  ;;  %v839_v57 = vmul.f32 %v838_v24, %v745_v56  ;;  %v866_v39 = vmul.f32 %v865_v36, %v745_v56  ;;  %v747_v59 = vpop.f32.mrb[5].mxu1  ;;  %v2195_v22 = vld [vmem:[%s3259_s13 + $0x48] sm:$0xff]  }
 0x2bc   :  { %v752_v42 = vmul.f32 %v747_v59, %v745_v56  ;;  %v753_v31 = vsub.f32 %v747_v59, %v745_v56  ;;  %v781_v58 = vmul.f32 %v780_v27, %v747_v59  ;;  %v814_v54 = vmul.f32 %v813_v28, %v747_v59  ;;  %v749_v44 = vpop.f32.mrb[6].mxu1 }
 0x2bd   :  { %v841_v12 = vmul.f32 %v840_v30, %v747_v59  ;;  %v868_v3 = vmul.f32 %v867_v14, %v747_v59  ;;  %v575_v5 = vpack.c.bf16 %v572_v50, %v571_v61  ;;  %v750_v6 = vpop.f32.mrb[7].mxu1 }
 0x2be   :  { %v782_v8 = vadd.f32 %v781_v58, %v779_v25  ;;  %v815_v32 = vadd.f32 %v814_v54, %v812_v1  ;;  %v844_v11 = vmul.f32 %v843_v37, %v752_v42  ;;  %v871_v7 = vmul.f32 %v870_v9, %v752_v42  ;;  %v1825_v58 = vld [vmem:[%s3233_s8 + $0x1] ss:$0 sm:$0xff] }
 0x2bf   :  { %v842_v24 = vadd.f32 %v841_v12, %v839_v57  ;;  %v869_v36 = vadd.f32 %v868_v3, %v866_v39  ;;  %2055 = vmatprep.mubr.bf16.mxu0 %v575_v5  ;;  %v784_v27 = vmul.f32 %v783_v34, %v752_v42  ;;  %v787_v28 = vmul.f32 %v786_v10, %v753_v31  ;;  %v2198_v57 = vld [vmem:[%s3259_s13 + $0x60] sm:$0xff]   ;;  %v2199_v5 = vld [vmem:[%s3259_s13 + $0x68] sm:$0xff]  }
 0x2c0   :  { %2056 = vmatmul.mubr.bf16.vlgmr.msra.gmra.mrb[4].mxu0 %v576_v51  ;;  %v817_v30 = vmul.f32 %v816_v45, %v752_v42  ;;  %v820_v14 = vmul.f32 %v819_v16, %v753_v31  ;;  %v847_v15 = vmul.f32 %v846_v33, %v753_v31  ;;  %v874_v18 = vmul.f32 %v873_v0, %v753_v31 }
 0x2c1   :  { %v845_v48 = vadd.f32 %v844_v11, %v842_v24  ;;  %v872_v49 = vadd.f32 %v871_v7, %v869_v36  ;;  %2060 = vmatpush3.bf16.msra.mxu0 %v2786_v17  ;;  %v785_v37 = vadd.f32 %v784_v27, %v782_v8  ;;  %v884_v9 = vadd.f32 %v883_v2, %v882_v53  ;;  %v1823_v53 = vld [vmem:[#allocation9 + $0x1] ss:$0 sm:$0xff]  ;;  %v2200_v7 = vld [vmem:[%s3259_s13 + $0x70] sm:$0xff]   ;;  %v2255_v36 = vld [vmem:[%s3261_s24] ss:$8 sps:$4 sm:$0xff]  }
 0x2c2   :  { %2061 = vmatprep.subr.bf16.mxu0 %v2195_v22  ;;  %v818_v34 = vadd.f32 %v817_v30, %v815_v32  ;;  %v830_v10 = vadd.f32 %v829_v29, %v828_v63  ;;  %v808_v16 = vrot.slane %v2905_v60, %v2706_v35  ;;  %v2197_v29 = vld [vmem:[%s3259_s13 + $0x58] sm:$0xff]   ;;  %v2254_v24 = vld [vmem:[%s3261_s24 + $0x4] ss:$8 sps:$4 sm:$0xff]  }
 0x2c3   :  { %v788_v43 = vadd.f32 %v787_v28, %v785_v37  ;;  %v848_v55 = vadd.f32 %v847_v15, %v845_v48  ;;  %v875_v45 = vadd.f32 %v874_v18, %v872_v49  ;;  %v889_v50 = vrot.slane %v884_v9, %v2706_v35  ;;  %v2256_v27 = vld [vmem:[%s3261_s24 + $0x14] ss:$8 sps:$4 sm:$0xff]   ;;  %v2257_v28 = vld [vmem:[%s3261_s24 + $0x10] ss:$8 sps:$4 sm:$0xff]   ;;  %v2258_v30 = vld [vmem:[%s3261_s24 + $0x24] ss:$8 sps:$4 sm:$0xff]  }
 0x2c4   :  { %v821_v33 = vadd.f32 %v820_v14, %v818_v34  ;;  %v835_v47 = vrot.slane %v830_v10, %v2706_v35  ;;  %v2259_v14 = vld [vmem:[%s3261_s24 + $0x20] ss:$8 sps:$4 sm:$0xff]   ;;  %v2261_v15 = vld [vmem:[%s3261_s24 + $0x30] ss:$8 sps:$4 sm:$0xff]   ;;  %v2262_v18 = vld [vmem:[%s3261_s24 + $0x44] ss:$8 sps:$4 sm:$0xff]  }
 0x2c5   :  { %2062 = vmatpush3.bf16.msra.mxu0 %v2195_v22  ;;  %v798_v17 = vmul.f32 %v1822_v26, %v788_v43  ;;  %v852_v62 = vmul.f32 %v1822_v26, %v848_v55  ;;  %v879_v0 = vmul.f32 %v1822_v26, %v875_v45  ;;  %v2201_v22 = vld [vmem:[%s3259_s13 + $0x78] sm:$0xff]   ;;  %v2263_v48 = vld [vmem:[%s3261_s24 + $0x40] ss:$8 sps:$4 sm:$0xff]   ;;  %v2266_v9 = vld [vmem:[%s3261_s24 + $0x64] ss:$8 sps:$4 sm:$0xff]  }
 0x2c6   :  { %2063 = vmatprep.subr.bf16.mxu0 %v2196_v41  ;;  %v825_v63 = vmul.f32 %v1822_v26, %v821_v33  ;;  %v2264_v49 = vld [vmem:[%s3261_s24 + $0x54] ss:$8 sps:$4 sm:$0xff]   ;;  %v2265_v37 = vld [vmem:[%s3261_s24 + $0x50] ss:$8 sps:$4 sm:$0xff]   ;;  %v2202_v26 = vld [vmem:[%s3236_s11 + $0x40] sm:$0xff]  }
 0x2c7   :  { %v799_v52 = vadd.f32 %v798_v17, %v745_v56  ;;  %v853_v61 = vadd.f32 %v852_v62, %v752_v42  ;;  %v880_v60 = vadd.f32 %v879_v0, %v753_v31  ;;  %2079 = vmatprep.subr.bf16.mxu1 %v2202_v26  ;;  %v2203_v34 = vld [vmem:[%s3236_s11 + $0x48] sm:$0xff]   ;;  %v2209_v10 = vld [vmem:[%s3236_s11 + $0x78] sm:$0xff]   ;;  %v3018_v43 = vld [vmem:[%s3259_s13 + $0x80] sm:$0xff]  }
 0x2c8   :  { %v826_v51 = vadd.f32 %v825_v63, %v747_v59  ;;  %2080 = vmatpush3.bf16.msra.mxu1 %v2202_v26  ;;  %v1790_v55 = vld [vmem:[%s3262_s19] ss:$0 sm:$0xff]  ;;  %v1880_v26 = vld [vmem:[%s3231_s6 + $0x2] sm:$0x1] }
 0x2c9   :  { %2064 = vmatpush3.bf16.msra.mxu0 %v2196_v41  ;;  %v810_v2 = vadd.f32 %v808_v16, %v799_v52  ;;  %v864_v25 = vadd.f32 %v862_v46, %v853_v61  ;;  %v891_v1 = vadd.f32 %v889_v50, %v880_v60  ;;  %v1210_v41 = vpop.permute.xlu1 %1209  ;;  %2081 = vmatprep.subr.bf16.mxu1 %v2203_v34  ;;  %v1843_v61 = vld [vmem:[%s3260_s20 + $0x1] ss:$0 sm:$0xff]  ;;  %s3109_s20 = sld [smem:[#allocation7 + $0x101]] }
 0x2ca   :  { %2065 = vmatprep.subr.bf16.mxu0 %v2197_v29  ;;  %v837_v39 = vadd.f32 %v835_v47, %v826_v51  ;;  %vm1211_vm4 = vcmp.eq.s32.totalorder %v2627_v23, %v1210_v41  ;;  %v2207_v23 = vld [vmem:[%s3236_s11 + $0x68] sm:$0xff]   ;;  %v1370_v41 = vstv %s3067_s5 }
 0x2cb   :  { %v900_v54 = vmul.f32 %v1823_v53, %v810_v2  ;;  %v902_v56 = vmul.f32 %v1823_v53, %v864_v25  ;;  %v903_v42 = vmul.f32 %v1823_v53, %v891_v1  ;;  %vm1878_vm5 = vmpackc.low %vm1211_vm4, %vm1211_vm4 }
 0x2cc   :  { %v901_v31 = vmul.f32 %v1823_v53, %v837_v39  ;;  %v1200_v59 = vadd.f32 %v837_v39, %v810_v2  ;;  %2082 = vmatpush3.bf16.msra.mxu1 %v2203_v34  ;;  %v1303_v34 = vstv %s1294_s18 }
 0x2cd   :  { %2066 = vmatpush3.bf16.msra.mxu0 %v2197_v29  ;;  %v912_v44 = vadd.f32 %v1825_v58, %v900_v54  ;;  %v914_v12 = vadd.f32 %v1825_v58, %v902_v56  ;;  %v915_v3 = vadd.f32 %v1825_v58, %v903_v42 }
 0x2ce   :  { %2067 = vmatprep.subr.bf16.mxu0 %v2198_v57  ;;  %v913_v6 = vadd.f32 %v1825_v58, %v901_v31  ;;  %v1201_v40 = vadd.f32 %v1200_v59, %v864_v25 }
 0x2cf   :  { %v917_v8 = vpack.c.bf16 %v915_v3, %v914_v12 }
 0x2d0   :  { %v916_v32 = vpack.c.bf16 %v913_v6, %v912_v44  ;;  %v2938_v11 = vadd.f32 %v1201_v40, %v891_v1 }
 0x2d1   :  { %2068 = vmatpush3.bf16.msra.mxu0 %v2198_v57 }
 0x2d2   :  { %2069 = vmatprep.subr.bf16.mxu0 %v2199_v5  ;;  %2075 = vmatprep.mubr.bf16.mxu0 %v916_v32 }
 0x2d5   :  { %2070 = vmatpush3.bf16.msra.mxu0 %v2199_v5 }
 0x2d6   :  { %2071 = vmatprep.subr.bf16.mxu0 %v2200_v7 }
 0x2d9   :  { %2072 = vmatpush3.bf16.msra.mxu0 %v2200_v7 }
 0x2da   :  { %2073 = vmatprep.subr.bf16.mxu0 %v2201_v22 }
 0x2dd   :  { %2074 = vmatpush3.bf16.msra.mxu0 %v2201_v22 }
 0x2de   :  { %1214 = vmatprep.subr.bf16.mxu0 %v2254_v24 }
 0x2e0   :  { %2076 = vmatmul.mubr.bf16.vlgmr.msra.gmra.mrb[8].mxu0 %v917_v8 }
 0x2e1   :  { %1215 = vmatpush1.bf16.msra.mxu0 %v2255_v36  ;;  %1246 = vmatprep.mubr.bf16.mxu0 %v3257_v38  ;;  %v2260_v38 = vld [vmem:[%s3261_s24 + $0x34] ss:$8 sps:$4 sm:$0xff]   ;;  %s3060_s24 = sld [smem:[#allocation3 + $0x108]] }
 0x2e2   :  { %1216 = vmatprep.subr.bf16.mxu0 %v2256_v27 }
 0x2e5   :  { %1217 = vmatpush1.bf16.msra.mxu0 %v2257_v28  ;;  %v1281_v28 = vstv %s3038_s21 }
 0x2e6   :  { %1218 = vmatprep.subr.bf16.mxu0 %v2258_v30  ;;  %v1314_v30 = vstv %s3052_s15 }
 0x2e7   :  { %s1352_s23 = sadd.f32 %s3062_s16, %s3060_s24 }
 0x2e9   :  { %1219 = vmatpush1.bf16.msra.mxu0 %v2259_v14  ;;  %s3102_s27 = sadd.f32 %s3078_s4, %s1352_s23  ;;  %s3265_s23 = sld [smem:[#allocation21_spill]] }
 0x2ea   :  { %1220 = vmatprep.subr.bf16.mxu0 %v2260_v38  ;;  %v1341_v38 = vstv %s3060_s24  ;;  %s1381_s24 = sadd.f32 %s3091_s25, %s3105_s10 }
 0x2ed   :  { %1221 = vmatpush1.bf16.msra.mxu0 %v2261_v15  ;;  %v1283_v15 = vstv %s3040_s22  ;;  %s3124_s22 = sld [smem:[#allocation7 + $0x103]] }
 0x2ee   :  { %1222 = vmatprep.subr.bf16.mxu0 %v2262_v18  ;;  %v1316_v18 = vstv %s3054_s29  ;;  %s1354_s29 = sadd.f32 %s3087_s3, %s3102_s27 }
 0x2f1   :  { %1223 = vmatpush1.bf16.msra.mxu0 %v2263_v48  ;;  %v1343_v48 = vstv %s3062_s16 }
 0x2f2   :  { %1224 = vmatprep.subr.bf16.mxu0 %v2264_v49 }
 0x2f5   :  { %1225 = vmatpush1.bf16.msra.mxu0 %v2265_v37 }
 0x2f6   :  { %1226 = vmatprep.subr.bf16.mxu0 %v2266_v9  ;;  %v1368_v9 = vstv %s3065_s0 }
 0x2f9   :  { %1227 = vmatpush1.bf16.msra.mxu0 %v2610_v19  ;;  %v2204_v19 = vld [vmem:[%s3236_s11 + $0x50] sm:$0xff]  }
 0x2fa   :  { %1228 = vmatprep.subr.bf16.mxu0 %v2615_v20  ;;  %2083 = vmatprep.subr.bf16.mxu1 %v2204_v19  ;;  %v2205_v20 = vld [vmem:[%s3236_s11 + $0x58] sm:$0xff]  }
 0x2fb   :  { %2084 = vmatpush3.bf16.msra.mxu1 %v2204_v19 }
 0x2fc   :  { %2085 = vmatprep.subr.bf16.mxu1 %v2205_v20 }
 0x2fd   :  { %1229 = vmatpush1.bf16.msra.mxu0 %v2622_v21  ;;  %v2206_v21 = vld [vmem:[%s3236_s11 + $0x60] sm:$0xff]  }
 0x2ff   :  { %2086 = vmatpush3.bf16.msra.mxu1 %v2205_v20  ;;  %v1346_v20 = vstv %s3078_s4 }
 0x300   :  { %1879 = vmatmul.mubr.msk.bf16.vlgmr.msra.gmra.mrb[12].mxu0 %vm1878_vm5, %v3258_v4  ;;  %2087 = vmatprep.subr.bf16.mxu1 %v2206_v21  ;;  %v2208_v4 = vld [vmem:[%s3236_s11 + $0x70] sm:$0xff]  }
 0x303   :  { %2088 = vmatpush3.bf16.msra.mxu1 %v2206_v21  ;;  %v1373_v21 = vstv %s3080_s12 }
 0x304   :  { %2089 = vmatprep.subr.bf16.mxu1 %v2207_v23 }
 0x307   :  { %2090 = vmatpush3.bf16.msra.mxu1 %v2207_v23 }
 0x308   :  { %2091 = vmatprep.subr.bf16.mxu1 %v2208_v4 }
 0x30b   :  { %2092 = vmatpush3.bf16.msra.mxu1 %v2208_v4  ;;  %v1286_v4 = vstv %s3057_s30 }
 0x30c   :  { %2093 = vmatprep.subr.bf16.mxu1 %v2209_v10 }
 0x30f   :  { %2094 = vmatpush3.bf16.msra.mxu1 %v2209_v10 }
 0x310   :  { %2099 = vmatprep.subr.bf16.mxu1 %v3018_v43 }
 0x393   :  { %v2057_v45 = vpop.f32.mrb[4].mxu0 }
 0x394   :  { %v682_v16 = vpop.f32.mrb[5].mxu0  ;;  %v691_v50 = vadd.f32 %v2057_v45, %v1790_v55 }
 0x395   :  { %v683_v33 = vadd.f32 %v1790_v55, %v682_v16  ;;  %v2058_v46 = vpop.f32.mrb[6].mxu0  ;;  %v1289_v16 = vstv %s3073_s9 }
 0x396   :  { %v685_v17 = vpop.f32.mrb[7].mxu0  ;;  %v694_v63 = vadd.f32 %v2058_v46, %v1790_v55 }
 0x397   :  { %v700_v62 = vadd.f32 %v2739_v13, %v683_v33  ;;  %v686_v0 = vadd.f32 %v1790_v55, %v685_v17  ;;  %v1319_v33 = vstv %s3070_s28  ;;  %v1304_v17 = vmul.f32 %v1880_v26, %v1303_v34  ;;  %s3263_s28 = sld [smem:[#allocation19_spill]] }
 0x399   :  { %v701_v29 = vadd.f32 %v700_v62, %v686_v0  ;;  %v1322_v62 = vstv %s3084_s17  ;;  %v1330_v0 = vstv %s1327_s14  ;;  %s3264_s17 = sld [smem:[#allocation16_spill]] }
 0x39b   :  { %v702_v47 = vadd.f32 %v701_v29, %v691_v50 }
 0x39d   :  { %v3025_v52 = vadd.f32 %v702_v47, %v694_v63  ;;  %v1305_v63 = vstv %s3099_s26  ;;  %v1357_v47 = vstv %s1354_s29 }
 0x3b3   :  { %v2077_v60 = vpop.f32.mrb[8].mxu0 }
 0x3b4   :  { %v3030_v51 = vadd.f32 %v2077_v60, %v1843_v61  ;;  %v1025_v53 = vpop.f32.mrb[9].mxu0  ;;  %v1349_v60 = vstv %s3087_s3 }
 0x3b5   :  { %v3032_v2 = vadd.f32 %v1843_v61, %v1025_v53  ;;  %v2078_v25 = vpop.f32.mrb[10].mxu0  ;;  %v1376_v53 = vstv %s3091_s25 }
 0x3b6   :  { %v1042_v13 = vmul.f32 %v3030_v51, %v3030_v51  ;;  %v3036_v1 = vadd.f32 %v2078_v25, %v1843_v61  ;;  %v1028_v57 = vpop.f32.mrb[11].mxu0  ;;  %v1384_v25 = vstv %s1381_s24 }
 0x3b7   :  { %v1040_v39 = vmul.f32 %v3032_v2, %v3032_v2  ;;  %v3044_v58 = vadd.f32 %v1843_v61, %v1028_v57 }
 0x3b8   :  { %v1046_v54 = vmul.f32 %v1042_v13, %v3030_v51  ;;  %v1043_v56 = vmul.f32 %v3036_v1, %v3036_v1 }
 0x3b9   :  { %v1044_v42 = vmul.f32 %v1040_v39, %v3032_v2  ;;  %v1041_v31 = vmul.f32 %v3044_v58, %v3044_v58  ;;  %v1331_v39 = vmul.f32 %v1880_v26, %v1330_v0 }
 0x3ba   :  { %v1050_v59 = vmul.f32 0.044715, %v1046_v54  ;;  %v1047_v44 = vmul.f32 %v1043_v56, %v3036_v1  ;;  %v1332_v54 = vstv %s3109_s20 }
 0x3bb   :  { %v1048_v12 = vmul.f32 0.044715, %v1044_v42  ;;  %v1045_v3 = vmul.f32 %v1041_v31, %v3044_v58  ;;  %v3143_v42 = vadd.f32 %v1305_v63, %v1304_v17  ;;  %v1358_v31 = vmul.f32 %v1880_v26, %v1357_v47  ;;  %v1901_v17 = vld [vmem:[#allocation8 + $0x2] ss:$0 sm:$0xff] }
 0x3bc   :  { %v1054_v5 = vadd.f32 %v1050_v59, %v3030_v51  ;;  %v1051_v6 = vmul.f32 0.044715, %v1047_v44  ;;  %v1359_v59 = vstv %s3117_s2 }
 0x3bd   :  { %v1052_v40 = vadd.f32 %v1048_v12, %v3032_v2  ;;  %v1049_v8 = vmul.f32 0.044715, %v1045_v3  ;;  %v1360_v34 = vadd.f32 %v1359_v59, %v1358_v31 }
 0x3be   :  { %v1058_v32 = vmul.f32 0.7978846, %v1054_v5  ;;  %v1055_v7 = vadd.f32 %v1051_v6, %v3036_v1  ;;  %v1385_v5 = vmul.f32 %v1880_v26, %v1384_v25  ;;  %v1386_v6 = vstv %s3124_s22 }
 0x3bf   :  { %v1056_v22 = vmul.f32 0.7978846, %v1052_v40  ;;  %v1053_v24 = vadd.f32 %v1049_v8, %v3044_v58  ;;  %v1365_v63 = vrot.slane %v1360_v34, %v2706_v35  ;;  %v2218_v34 = vld [vmem:[%s3236_s11 + $0x80] sm:$0xff]  }
 0x3c0   :  { %2234 = vtanh.f32 %v1058_v32  ;;  %v1059_v36 = vmul.f32 0.7978846, %v1055_v7  ;;  %2119 = vmatprep.subr.bf16.mxu0 %v2218_v34 }
 0x3c1   :  { %2236 = vtanh.f32 %v1056_v22  ;;  %v1057_v27 = vmul.f32 0.7978846, %v1053_v24  ;;  %2120 = vmatpush3.bf16.msra.mxu0 %v2218_v34 }
 0x3c2   :  { %2238 = vtanh.f32 %v1059_v36 }
 0x3c3   :  { %2240 = vtanh.f32 %v1057_v27 }
 0x3ca   :  { %v2235_v14 = vpop.eup %2234 }
 0x3cb   :  { %v2237_v49 = vpop.eup %2236  ;;  %v1066_v37 = vadd.f32 1.0, %v2235_v14 }
 0x3cc   :  { %v2239_v19 = vpop.eup %2238  ;;  %v1064_v23 = vadd.f32 1.0, %v2237_v49 }
 0x3cd   :  { %v2241_v10 = vpop.eup %2240  ;;  %v1070_v55 = vmul.f32 0.5, %v1066_v37  ;;  %v1067_v45 = vadd.f32 1.0, %v2239_v19 }
 0x3ce   :  { %v1065_v46 = vadd.f32 1.0, %v2241_v10  ;;  %v1068_v29 = vmul.f32 0.5, %v1064_v23 }
 0x3cf   :  { %v1071_v50 = vmul.f32 0.5, %v1067_v45  ;;  %v1074_v13 = vmul.f32 %v1070_v55, %v3030_v51 }
 0x3d0   :  { %v1069_v61 = vmul.f32 0.5, %v1065_v46  ;;  %v1072_v12 = vmul.f32 %v1068_v29, %v3032_v2  ;;  %v2212_v46 = vld [vmem:[%s3259_s13 + $0x90] sm:$0xff]  }
 0x3d1   :  { %v1075_v57 = vmul.f32 %v1071_v50, %v3036_v1 }
 0x3d2   :  { %v1073_v56 = vmul.f32 %v1069_v61, %v3044_v58 }
 0x3d3   :  { %v1248_v44 = vpop.f32.mrb[12].mxu0  ;;  %v1077_v3 = vpack.c.bf16 %v1075_v57, %v1074_v13 }
 0x3d4   :  { %v1282_v40 = vmul.f32 %v1281_v28, %v1248_v44  ;;  %v1315_v8 = vmul.f32 %v1314_v30, %v1248_v44  ;;  %v1342_v32 = vmul.f32 %v1341_v38, %v1248_v44  ;;  %v1369_v51 = vmul.f32 %v1368_v9, %v1248_v44  ;;  %v1250_v7 = vpop.f32.mrb[13].mxu0  ;;  %v2211_v28 = vld [vmem:[%s3259_s13 + $0x88] sm:$0xff]  }
 0x3d5   :  { %v1255_v1 = vmul.f32 %v1250_v7, %v1248_v44  ;;  %v1256_v22 = vsub.f32 %v1250_v7, %v1248_v44  ;;  %v1284_v24 = vmul.f32 %v1283_v15, %v1250_v7  ;;  %v1317_v36 = vmul.f32 %v1316_v18, %v1250_v7  ;;  %v1252_v58 = vpop.f32.mrb[14].mxu0 }
 0x3d6   :  { %v1344_v27 = vmul.f32 %v1343_v48, %v1250_v7  ;;  %v1371_v14 = vmul.f32 %v1370_v41, %v1250_v7  ;;  %v1076_v49 = vpack.c.bf16 %v1073_v56, %v1072_v12  ;;  %v1253_v37 = vpop.f32.mrb[15].mxu0 }
 0x3d7   :  { %v1285_v19 = vadd.f32 %v1284_v24, %v1282_v40  ;;  %v1318_v2 = vadd.f32 %v1317_v36, %v1315_v8  ;;  %v1347_v23 = vmul.f32 %v1346_v20, %v1255_v1  ;;  %v1374_v26 = vmul.f32 %v1373_v21, %v1255_v1  ;;  %v2217_v37 = vld [vmem:[%s3259_s13 + $0xb8] sm:$0xff]  }
 0x3d8   :  { %v1345_v30 = vadd.f32 %v1344_v27, %v1342_v32  ;;  %v1372_v38 = vadd.f32 %v1371_v14, %v1369_v51  ;;  %2095 = vmatprep.mubr.bf16.mxu1 %v1076_v49  ;;  %v1287_v9 = vmul.f32 %v1286_v4, %v1255_v1  ;;  %v1290_v15 = vmul.f32 %v1289_v16, %v1256_v22  ;;  %v2216_v49 = vld [vmem:[%s3259_s13 + $0xb0] sm:$0xff]  }
 0x3d9   :  { %2096 = vmatmul.mubr.bf16.vlgmr.msra.gmra.mrb[8].mxu1 %v1077_v3  ;;  %v1320_v18 = vmul.f32 %v1319_v33, %v1255_v1  ;;  %v1323_v48 = vmul.f32 %v1322_v62, %v1256_v22  ;;  %v1350_v41 = vmul.f32 %v1349_v60, %v1256_v22  ;;  %v1377_v10 = vmul.f32 %v1376_v53, %v1256_v22  ;;  %v2213_v53 = vld [vmem:[%s3259_s13 + $0x98] sm:$0xff]   ;;  %v2214_v3 = vld [vmem:[%s3259_s13 + $0xa0] sm:$0xff]  }
 0x3da   :  { %v1348_v55 = vadd.f32 %v1347_v23, %v1345_v30  ;;  %v1375_v45 = vadd.f32 %v1374_v26, %v1372_v38  ;;  %2100 = vmatpush3.bf16.msra.mxu1 %v3018_v43  ;;  %v1288_v20 = vadd.f32 %v1287_v9, %v1285_v19  ;;  %v1387_v21 = vadd.f32 %v1386_v6, %v1385_v5  ;;  %v1904_v6 = vld [vmem:[%s3233_s8 + $0x2] ss:$0 sm:$0xff]  ;;  %v2219_v19 = vld [vmem:[%s3236_s11 + $0x88] sm:$0xff]   ;;  %v2221_v23 = vld [vmem:[%s3236_s11 + $0x98] sm:$0xff]  }
 0x3db   :  { %2101 = vmatprep.subr.bf16.mxu1 %v2211_v28  ;;  %v1321_v0 = vadd.f32 %v1320_v18, %v1318_v2  ;;  %v1333_v4 = vadd.f32 %v1332_v54, %v1331_v39  ;;  %v1311_v62 = vrot.slane %v3143_v42, %v2706_v35  ;;  %v1902_v42 = vld [vmem:[#allocation9 + $0x2] ss:$0 sm:$0xff]  ;;  %2121 = vmatprep.subr.bf16.mxu0 %v2219_v19  ;;  %v2220_v2 = vld [vmem:[%s3236_s11 + $0x90] sm:$0xff]   ;;  %v2225_v38 = vld [vmem:[%s3236_s11 + $0xb8] sm:$0xff]  }
 0x3dc   :  { %v1291_v16 = vadd.f32 %v1290_v15, %v1288_v20  ;;  %v1351_v50 = vadd.f32 %v1350_v41, %v1348_v55  ;;  %v1378_v33 = vadd.f32 %v1377_v10, %v1375_v45  ;;  %v1392_v60 = vrot.slane %v1387_v21, %v2706_v35  ;;  %2122 = vmatpush3.bf16.msra.mxu0 %v2219_v19  ;;  %v2222_v26 = vld [vmem:[%s3236_s11 + $0xa0] sm:$0xff]   ;;  %v2224_v30 = vld [vmem:[%s3236_s11 + $0xb0] sm:$0xff]  }
 0x3dd   :  { %v1324_v29 = vadd.f32 %v1323_v48, %v1321_v0  ;;  %v1338_v13 = vrot.slane %v1333_v4, %v2706_v35  ;;  %2123 = vmatprep.subr.bf16.mxu0 %v2220_v2  ;;  %v1869_v9 = vld [vmem:[%s3262_s19 + $0x1] ss:$0 sm:$0xff]  ;;  %v704_v4 = vmul.f32 0.25, %v3025_v52 }
 0x3de   :  { %2102 = vmatpush3.bf16.msra.mxu1 %v2211_v28  ;;  %v1301_v43 = vmul.f32 %v1901_v17, %v1291_v16  ;;  %v1355_v47 = vmul.f32 %v1901_v17, %v1351_v50  ;;  %v1382_v61 = vmul.f32 %v1901_v17, %v1378_v33  ;;  %v2223_v28 = vld [vmem:[%s3236_s11 + $0xa8] sm:$0xff]   ;;  %v1922_v33 = vld [vmem:[%s3263_s28 + $0x2] ss:$0 sm:$0xff] }
 0x3df   :  { %2103 = vmatprep.subr.bf16.mxu1 %v2212_v46  ;;  %v1328_v25 = vmul.f32 %v1901_v17, %v1324_v29 }
 0x3e0   :  { %v1302_v57 = vadd.f32 %v1301_v43, %v1248_v44  ;;  %v1356_v39 = vadd.f32 %v1355_v47, %v1255_v1  ;;  %v1383_v54 = vadd.f32 %v1382_v61, %v1256_v22  ;;  %v2215_v22 = vld [vmem:[%s3259_s13 + $0xa8] sm:$0xff]   ;;  %2124 = vmatpush3.bf16.msra.mxu0 %v2220_v2 }
 0x3e1   :  { %v1329_v56 = vadd.f32 %v1328_v25, %v1250_v7  ;;  %2125 = vmatprep.subr.bf16.mxu0 %v2221_v23 }
 0x3e2   :  { %2104 = vmatpush3.bf16.msra.mxu1 %v2212_v46  ;;  %v1313_v31 = vadd.f32 %v1311_v62, %v1302_v57  ;;  %v1367_v59 = vadd.f32 %v1365_v63, %v1356_v39  ;;  %v1394_v12 = vadd.f32 %v1392_v60, %v1383_v54 }
 0x3e3   :  { %2105 = vmatprep.subr.bf16.mxu1 %v2213_v53  ;;  %v1340_v5 = vadd.f32 %v1338_v13, %v1329_v56 }
 0x3e4   :  { %v1403_v35 = vmul.f32 %v1902_v42, %v1313_v31  ;;  %v1405_v44 = vmul.f32 %v1902_v42, %v1367_v59  ;;  %v1406_v40 = vmul.f32 %v1902_v42, %v1394_v12  ;;  %2126 = vmatpush3.bf16.msra.mxu0 %v2221_v23 }
 0x3e5   :  { %v1404_v8 = vmul.f32 %v1902_v42, %v1340_v5  ;;  %v1703_v32 = vadd.f32 %v1340_v5, %v1313_v31  ;;  %2127 = vmatprep.subr.bf16.mxu0 %v2222_v26 }
 0x3e6   :  { %2106 = vmatpush3.bf16.msra.mxu1 %v2213_v53  ;;  %v1415_v51 = vadd.f32 %v1904_v6, %v1403_v35  ;;  %v1417_v7 = vadd.f32 %v1904_v6, %v1405_v44  ;;  %v1418_v1 = vadd.f32 %v1904_v6, %v1406_v40 }
 0x3e7   :  { %2107 = vmatprep.subr.bf16.mxu1 %v2214_v3  ;;  %v1416_v24 = vadd.f32 %v1904_v6, %v1404_v8  ;;  %v1704_v36 = vadd.f32 %v1703_v32, %v1367_v59 }
 0x3e8   :  { %v1420_v58 = vpack.c.bf16 %v1418_v1, %v1417_v7  ;;  %2128 = vmatpush3.bf16.msra.mxu0 %v2222_v26 }
 0x3e9   :  { %v1419_v27 = vpack.c.bf16 %v1416_v24, %v1415_v51  ;;  %v3172_v14 = vadd.f32 %v1704_v36, %v1394_v12  ;;  %2129 = vmatprep.subr.bf16.mxu0 %v2223_v28 }
 0x3ea   :  { %2108 = vmatpush3.bf16.msra.mxu1 %v2214_v3 }
 0x3eb   :  { %2109 = vmatprep.subr.bf16.mxu1 %v2215_v22  ;;  %2115 = vmatprep.mubr.bf16.mxu1 %v1419_v27 }
 0x3ec   :  { %2130 = vmatpush3.bf16.msra.mxu0 %v2223_v28 }
 0x3ed   :  { %2131 = vmatprep.subr.bf16.mxu0 %v2224_v30 }
 0x3ee   :  { %2110 = vmatpush3.bf16.msra.mxu1 %v2215_v22 }
 0x3ef   :  { %2111 = vmatprep.subr.bf16.mxu1 %v2216_v49 }
 0x3f0   :  { %2132 = vmatpush3.bf16.msra.mxu0 %v2224_v30 }
 0x3f1   :  { %2133 = vmatprep.subr.bf16.mxu0 %v2225_v38 }
 0x3f2   :  { %2112 = vmatpush3.bf16.msra.mxu1 %v2216_v49 }
 0x3f3   :  { %2113 = vmatprep.subr.bf16.mxu1 %v2217_v37 }
 0x3f4   :  { %2134 = vmatpush3.bf16.msra.mxu0 %v2225_v38 }
 0x3f6   :  { %2114 = vmatpush3.bf16.msra.mxu1 %v2217_v37 }
 0x3f9   :  { %2116 = vmatmul.mubr.bf16.vlgmr.msra.gmra.mrb[12].mxu1 %v1420_v58 }
 0x4ac   :  { %v2097_v15 = vpop.f32.mrb[8].mxu1 }
 0x4ad   :  { %v1185_v18 = vpop.f32.mrb[9].mxu1  ;;  %v1194_v20 = vadd.f32 %v2097_v15, %v1869_v9 }
 0x4ae   :  { %v1186_v48 = vadd.f32 %v1869_v9, %v1185_v18  ;;  %v2098_v41 = vpop.f32.mrb[10].mxu1 }
 0x4af   :  { %v1188_v10 = vpop.f32.mrb[11].mxu1  ;;  %v1197_v46 = vadd.f32 %v2098_v41, %v1869_v9 }
 0x4b0   :  { %v1203_v55 = vadd.f32 %v2938_v11, %v1186_v48  ;;  %v1189_v45 = vadd.f32 %v1869_v9, %v1188_v10  ;;  %v1948_v9 = vld [vmem:[%s3262_s19 + $0x2] ss:$0 sm:$0xff] }
 0x4b2   :  { %v1204_v21 = vadd.f32 %v1203_v55, %v1189_v45 }
 0x4b4   :  { %v1205_v17 = vadd.f32 %v1204_v21, %v1194_v20 }
 0x4b6   :  { %v1206_v0 = vadd.f32 %v1205_v17, %v1197_v46 }
 0x4b8   :  { %v1207_v16 = vmul.f32 0.25, %v1206_v0 }
 0x4ba   :  { %v3209_v50 = vmul.f32 %v1207_v16, %v704_v4  ;;  %v1957_v16 = vld [vmem:[#allocation11] ss:$0 sm:$0xff] }
 0x4cc   :  { %v2117_v62 = vpop.f32.mrb[12].mxu1 }
 0x4cd   :  { %v1537_v29 = vadd.f32 %v2117_v62, %v1922_v33  ;;  %v1528_v63 = vpop.f32.mrb[13].mxu1 }
 0x4ce   :  { %v1529_v43 = vadd.f32 %v1922_v33, %v1528_v63  ;;  %v2118_v11 = vpop.f32.mrb[14].mxu1 }
 0x4cf   :  { %v1545_v47 = vmul.f32 %v1537_v29, %v1537_v29  ;;  %v1540_v61 = vadd.f32 %v2118_v11, %v1922_v33  ;;  %v1531_v60 = vpop.f32.mrb[15].mxu1 }
 0x4d0   :  { %v1543_v53 = vmul.f32 %v1529_v43, %v1529_v43  ;;  %v1532_v25 = vadd.f32 %v1922_v33, %v1531_v60 }
 0x4d1   :  { %v1549_v13 = vmul.f32 %v1545_v47, %v1537_v29  ;;  %v1546_v57 = vmul.f32 %v1540_v61, %v1540_v61 }
 0x4d2   :  { %v1547_v52 = vmul.f32 %v1543_v53, %v1529_v43  ;;  %v1544_v39 = vmul.f32 %v1532_v25, %v1532_v25 }
 0x4d3   :  { %v1553_v54 = vmul.f32 0.044715, %v1549_v13  ;;  %v1550_v56 = vmul.f32 %v1546_v57, %v1540_v61 }
 0x4d4   :  { %v1551_v42 = vmul.f32 0.044715, %v1547_v52  ;;  %v1548_v31 = vmul.f32 %v1544_v39, %v1532_v25 }
 0x4d5   :  { %v1557_v59 = vadd.f32 %v1553_v54, %v1537_v29  ;;  %v1554_v12 = vmul.f32 0.044715, %v1550_v56 }
 0x4d6   :  { %v1555_v3 = vadd.f32 %v1551_v42, %v1529_v43  ;;  %v1552_v5 = vmul.f32 0.044715, %v1548_v31 }
 0x4d7   :  { %v1561_v6 = vmul.f32 0.7978846, %v1557_v59  ;;  %v1558_v35 = vadd.f32 %v1554_v12, %v1540_v61 }
 0x4d8   :  { %v1559_v44 = vmul.f32 0.7978846, %v1555_v3  ;;  %v1556_v40 = vadd.f32 %v1552_v5, %v1532_v25 }
 0x4d9   :  { %2242 = vtanh.f32 %v1561_v6  ;;  %v1562_v8 = vmul.f32 0.7978846, %v1558_v35 }
 0x4da   :  { %2244 = vtanh.f32 %v1559_v44  ;;  %v1560_v32 = vmul.f32 0.7978846, %v1556_v40 }
 0x4db   :  { %2246 = vtanh.f32 %v1562_v8 }
 0x4dc   :  { %2248 = vtanh.f32 %v1560_v32 }
 0x4e3   :  { %v2243_v51 = vpop.eup %2242 }
 0x4e4   :  { %v2245_v7 = vpop.eup %2244  ;;  %v1569_v1 = vadd.f32 1.0, %v2243_v51 }
 0x4e5   :  { %v2247_v22 = vpop.eup %2246  ;;  %v1567_v24 = vadd.f32 1.0, %v2245_v7 }
 0x4e6   :  { %v2249_v36 = vpop.eup %2248  ;;  %v1573_v58 = vmul.f32 0.5, %v1569_v1  ;;  %v1570_v27 = vadd.f32 1.0, %v2247_v22 }
 0x4e7   :  { %v1568_v49 = vadd.f32 1.0, %v2249_v36  ;;  %v1571_v37 = vmul.f32 0.5, %v1567_v24 }
 0x4e8   :  { %v1574_v34 = vmul.f32 0.5, %v1570_v27  ;;  %v1577_v2 = vmul.f32 %v1573_v58, %v1537_v29  ;;  %v1724_v29 = vstv %s3264_s17 }
 0x4e9   :  { %v1572_v19 = vmul.f32 0.5, %v1568_v49  ;;  %v1575_v26 = vmul.f32 %v1571_v37, %v1529_v43 }
 0x4ea   :  { %v1578_v23 = vmul.f32 %v1574_v34, %v1540_v61 }
 0x4eb   :  { %v1576_v28 = vmul.f32 %v1572_v19, %v1532_v25 }
 0x4ec   :  { %v1580_v30 = vpack.c.bf16 %v1578_v23, %v1577_v2 }
 0x4ed   :  { %v1579_v38 = vpack.c.bf16 %v1576_v28, %v1575_v26 }
 0x4ef   :  { %2135 = vmatprep.mubr.bf16.mxu0 %v1579_v38 }
 0x4f0   :  { %2136 = vmatmul.mubr.bf16.vlgmr.msra.gmra.mrb[16].mxu0 %v1580_v30 }
 0x5c3   :  { %v2137_v15 = vpop.f32.mrb[16].mxu0 }
 0x5c4   :  { %v1688_v18 = vpop.f32.mrb[17].mxu0  ;;  %v1697_v20 = vadd.f32 %v2137_v15, %v1948_v9 }
 0x5c5   :  { %v1689_v48 = vadd.f32 %v1948_v9, %v1688_v18  ;;  %v2138_v41 = vpop.f32.mrb[18].mxu0 }
 0x5c6   :  { %v1691_v10 = vpop.f32.mrb[19].mxu0  ;;  %v1700_v46 = vadd.f32 %v2138_v41, %v1948_v9 }
 0x5c7   :  { %v1706_v55 = vadd.f32 %v3172_v14, %v1689_v48  ;;  %v1692_v45 = vadd.f32 %v1948_v9, %v1691_v10 }
 0x5c9   :  { %v1707_v21 = vadd.f32 %v1706_v55, %v1692_v45 }
 0x5cb   :  { %v1708_v17 = vadd.f32 %v1707_v21, %v1697_v20 }
 0x5cd   :  { %v1709_v0 = vadd.f32 %v1708_v17, %v1700_v46 }
 0x5cf   :  { %v1710_v4 = vmul.f32 0.25, %v1709_v0 }
 0x5d1   :  { %v1712_v33 = vmul.f32 %v3209_v50, %v1710_v4 }
 0x5d3   :  { %v1720_v62 = vmul.f32 %v1957_v16, %v1712_v33 }
 0x5d5   :  { %1721 = vadd.xlane.f32.xlu1 %v1720_v62 }
 0x662   :  { %v1722_v63 = vpop.xlane.xlu1 %1721 }
 0x663   :  { %v1725_v43 = vadd.f32 %v1724_v29, %v1722_v63 }
 0x665   :  { %v1958_v11 = vmul.f32 -1.442695, %v1725_v43 }
 0x667   :  { %2250 = vpow2.f32 %v1958_v11 }
 0x671   :  { %v2251_v14 = vpop.eup %2250 }
 0x672   :  { %v1729_v47 = vadd.f32 1.0, %v2251_v14 }
 0x674   :  { %2252 = vrcp.f32 %v1729_v47 }
 0x67e   :  { %v2253_v61 = vpop.eup %2252 }
 0x67f   :  { %1733 = vst.msk [vmem:[%s3265_s23] sm:$0xff] %vm1732_vm6, %v2253_v61 }
 0x680   :  { %1738 = vsyncpa [#allocation4], 1 }
 0x681   :  { %1739 = vsyncpa [#allocation10], 1 }
 0x682   :  { %1740 = vsyncpa [#allocation5], 1 }
 0x683   :  { %1741 = vsyncpa [#allocation6], 1 }

</bundles_post_ra>
